<compile_context>
chip_gen: v7x
topology: tpu7x:2x2x1
jax: 0.10.0
libtpu: 0.0.40
codegen_flags: <defaults>
</compile_context>

<pallas_src>
import functools

import jax
import jax.numpy as jnp
from jax.experimental import pallas as pl
from jax.experimental.pallas import tpu as pltpu


def _round_up(x, m):
    return ((x + m - 1) // m) * m


def _vmem_params():
    """(per-step VMEM budget, vmem_limit_bytes) tuned per TPU generation."""
    cap = None
    try:
        info = pltpu.get_tpu_info()
        for attr in ("vmem_capacity_bytes", "vmem_bytes", "vmem_size_bytes"):
            v = getattr(info, attr, None)
            if v:
                cap = int(v)
                break
    except Exception:
        cap = None
    if cap is None:
        cap = 64 << 20                       # unknown -> assume the smallest (v7x-class)
    if cap <= (64 << 20):                    # v7x: 64 MiB VMEM per TensorCore
        return 7 << 20, 48 << 20
    return 14 << 20, 100 << 20               # v5e / v6e: 128 MiB VMEM


def _pick_tile_h(B, H, W, Cin, Cout_pad, in_itemsize, w_itemsize, out_itemsize,
                 fold9, budget_bytes):
    """Largest row-tile height that fits the per-step VMEM budget.

    Counts: double-buffered main+halo inputs, double-buffered output, double-buffered
    resident weights + bias, the in-kernel concat temporaries and the f32 accumulator.
    Prefers >= 4 total grid steps (>= 2 per TensorCore on v7x megacore).
    """
    lane_i = _round_up(Cin, 128)
    sub_w = _round_up(W, 8)
    sub_wp2 = _round_up(W + 2, 8)
    if fold9:
        w_bytes = _round_up(9 * Cin, 8) * Cout_pad * w_itemsize
    else:
        w_bytes = 9 * _round_up(Cin, 8) * Cout_pad * w_itemsize
    resident = 2 * w_bytes + 2 * 8 * Cout_pad * 4        # 2x-buffered weights + bias

    def step_bytes(th):
        inp = 2 * (th + 2) * sub_w * lane_i * in_itemsize          # main + 2 halo rows, x2 buf
        out = 2 * th * sub_w * Cout_pad * out_itemsize             # output tile, x2 buf
        rows = (th + 2) * sub_w * lane_i * in_itemsize             # row-concat temp
        xp = (th + 2) * sub_wp2 * lane_i * in_itemsize             # column-padded temp
        patch = th * sub_w * _round_up(9 * Cin, 128) * in_itemsize if fold9 else 0
        acc = th * sub_w * Cout_pad * 4                            # f32 accumulator
        return resident + inp + out + rows + xp + patch + acc

    cands = list(range(8, _round_up(H, 8) + 1, 8))
    fitting = [th for th in cands if step_bytes(th) <= budget_bytes]
    if not fitting:
        for th in (8, 4, 2, 1):
            if step_bytes(th) <= budget_bytes:
                return th
        return 1
    deep = [th for th in fitting if B * (-(-H // th)) >= 4]
    return max(deep or fitting)


def _conv3x3_kernel(x_main_ref, x_top_ref, x_bot_ref, w_ref, b_ref, o_ref,
                    *, tile_h, W, Cin, Cout_pad, n_htiles, use_refl, fold9):
    """One (batch, row-tile) step of the padded 3x3 conv.

    x_main_ref: (1, tile_h, W, Cin)      rows [h*tile_h, (h+1)*tile_h)
    x_top_ref : (1, 1, W, Cin)           row above the tile (index_map already reflects)
    x_bot_ref : (1, 1, W, Cin)           row below the tile (index_map already reflects)
    w_ref     : (9*Cin, Cout_pad)        if fold9 else (3, 3, Cin, Cout_pad)
    b_ref     : (1, Cout_pad)            bias (f32, zero-padded)
    o_ref     : (1, tile_h, W, Cout_pad) lane-dense output tile
    """
    h = pl.program_id(1)

    top = x_top_ref[0]       # (1, W, Cin)
    bot = x_bot_ref[0]       # (1, W, Cin)
    main = x_main_ref[0]     # (tile_h, W, Cin)

    if not use_refl:
        # Zero padding: boundary halo rows become zeros.
        top = jnp.where(h == 0, jnp.zeros_like(top), top)
        bot = jnp.where(h == n_htiles - 1, jnp.zeros_like(bot), bot)

    # rows[j] == padded-image row (h*tile_h + j)
    rows = jnp.concatenate([top, main, bot], axis=0)            # (tile_h+2, W, Cin)

    # Fused left/right column padding (reflection: col -1 == col 1, col W == col W-2).
    if use_refl:
        lpad = rows[:, 1:2, :]
        rpad = rows[:, W - 2:W - 1, :]
    else:
        lpad = jnp.zeros_like(rows[:, 0:1, :])
        rpad = lpad
    xpad = jnp.concatenate([lpad, rows, rpad], axis=1)          # (tile_h+2, W+2, Cin)

    cdt = w_ref.dtype
    if fold9:
        # Small Cin: one fat MXU matmul with K = 9*Cin; contributions never leave vregs/VMEM
        # via an explicit scratch ref.
        patch = jnp.concatenate(
            [xpad[kh:kh + tile_h, kw:kw + W, :] for kh in range(3) for kw in range(3)],
            axis=-1)                                            # (tile_h, W, 9*Cin)
        patch = patch.reshape(tile_h * W, 9 * Cin).astype(cdt)
        acc = jnp.dot(patch, w_ref[...], preferred_element_type=jnp.float32)
    else:
        # Large Cin: 9 direct-slice matmuls (K = Cin each), no im2col concat / copies.
        acc = None
        for kh in range(3):
            for kw in range(3):
                win = xpad[kh:kh + tile_h, kw:kw + W, :]
                win = win.reshape(tile_h * W, Cin).astype(cdt)
                contrib = jnp.dot(win, w_ref[kh, kw], preferred_element_type=jnp.float32)
                acc = contrib if acc is None else acc + contrib

    out = acc + b_ref[...]                                      # (tile_h*W, Cout_pad), f32
    o_ref[...] = out.reshape(1, tile_h, W, Cout_pad).astype(o_ref.dtype)


def conv3x3_pallas(x_nchw, weight_oihw, bias, use_refl=True, compute_dtype=None):
    """PyTorch Conv3x3.forward: ReflectionPad2d(1) (or ZeroPad2d(1)) + Conv2d(k=3, bias).

    x_nchw:      (B, Cin, H, W)
    weight_oihw: (Cout, Cin, 3, 3)   (PyTorch layout)
    bias:        (Cout,)
    compute_dtype: e.g. jnp.bfloat16 to run inputs/weights through the MXU in bf16
                   (f32 accumulation is kept either way).
    returns:     (B, Cout, H, W)
    """
    B, Cin, H, W = x_nchw.shape
    Cout = weight_oihw.shape[0]
    assert H >= 2 and W >= 2, "3x3 conv with pad=1 needs H, W >= 2"

    Cout_pad = _round_up(Cout, 128)
    fold9 = Cin <= 42            # 3*43 > 128: beyond this, direct K=Cin matmuls win

    # TODO(synk): fuse this transpose (and the output one) into the kernel.
    x_nhwc = jnp.transpose(x_nchw, (0, 2, 3, 1))
    if compute_dtype is not None:
        x_nhwc = x_nhwc.astype(compute_dtype)

    # OIHW -> HWIO, zero-pad Cout to a lane-dense multiple of 128.
    w_hwio = jnp.transpose(weight_oihw, (2, 3, 1, 0))
    w_hwio = jnp.pad(w_hwio, ((0, 0), (0, 0), (0, 0), (0, Cout_pad - Cout)))
    if fold9:
        w_arr = w_hwio.reshape(9 * Cin, Cout_pad)   # row index = (kh*3 + kw)*Cin + ci
        w_spec = pl.BlockSpec((9 * Cin, Cout_pad), lambda b, h: (0, 0))
    else:
        w_arr = w_hwio                              # (3, 3, Cin, Cout_pad)
        w_spec = pl.BlockSpec((3, 3, Cin, Cout_pad), lambda b, h: (0, 0, 0, 0))
    if compute_dtype is not None:
        w_arr = w_arr.astype(compute_dtype)
    b2d = jnp.pad(bias, (0, Cout_pad - Cout)).reshape(1, Cout_pad).astype(jnp.float32)

    budget, vmem_limit = _vmem_params()
    tile_h = _pick_tile_h(B, H, W, Cin, Cout_pad, x_nhwc.dtype.itemsize,
                          w_arr.dtype.itemsize, x_nchw.dtype.itemsize, fold9, budget)
    n_htiles = -(-H // tile_h)
    H_pad = n_htiles * tile_h

    # Pad H up to a tile multiple.  Row H is set to the true bottom neighbour of row H-1
    # (reflection source row H-2, or zeros), so every valid output row stays exact; the
    # remaining pad rows produce garbage that is sliced off below.
    if H_pad > H:
        nxt = x_nhwc[:, H - 2:H - 1] if use_refl else jnp.zeros_like(x_nhwc[:, :1])
        pieces = [x_nhwc, nxt]
        if H_pad - H > 1:
            pieces.append(jnp.zeros((B, H_pad - H - 1, W, Cin), x_nhwc.dtype))
        x_nhwc = jnp.concatenate(pieces, axis=1)

    # Halo-row index maps.  With reflection, the border halo rows are redirected to the
    # reflected source rows (row -1 -> row 1, row H -> row H-2), fully fusing the pad.
    if use_refl:
        top_map = lambda b, h: (b, jnp.where(h == 0, 1, h * tile_h - 1), 0, 0)
        bot_map = lambda b, h: (b, jnp.where(h == n_htiles - 1, H_pad - 2,
                                             (h + 1) * tile_h), 0, 0)
    else:
        top_map = lambda b, h: (b, jnp.maximum(h * tile_h - 1, 0), 0, 0)
        bot_map = lambda b, h: (b, jnp.minimum((h + 1) * tile_h, H_pad - 1), 0, 0)

    kernel = functools.partial(
        _conv3x3_kernel, tile_h=tile_h, W=W, Cin=Cin, Cout_pad=Cout_pad,
        n_htiles=n_htiles, use_refl=use_refl, fold9=fold9)

    cost = pl.CostEstimate(
        flops=2 * B * H_pad * W * Cout * 9 * Cin,
        transcendentals=0,
        bytes_accessed=int(x_nhwc.size * x_nhwc.dtype.itemsize
                           + w_arr.size * w_arr.dtype.itemsize
                           + B * H_pad * W * Cout_pad * x_nchw.dtype.itemsize))

    out_nhwc = pl.pallas_call(
        kernel,
        out_shape=jax.ShapeDtypeStruct((B, H_pad, W, Cout_pad), x_nchw.dtype),
        grid_spec=pltpu.PrefetchScalarGridSpec(
            num_scalar_prefetch=0,
            grid=(B, n_htiles),
            in_specs=[
                pl.BlockSpec((1, tile_h, W, Cin), lambda b, h: (b, h, 0, 0)),  # main rows
                pl.BlockSpec((1, 1, W, Cin), top_map),                         # top halo row
                pl.BlockSpec((1, 1, W, Cin), bot_map),                         # bottom halo row
                w_spec,                                                        # resident weights
                pl.BlockSpec((1, Cout_pad), lambda b, h: (0, 0)),              # resident bias
            ],
            out_specs=pl.BlockSpec((1, tile_h, W, Cout_pad), lambda b, h: (b, h, 0, 0)),
        ),
        compiler_params=pltpu.CompilerParams(
            dimension_semantics=("parallel", "parallel"),
            vmem_limit_bytes=vmem_limit),
        cost_estimate=cost,
    )(x_nhwc, x_nhwc, x_nhwc, w_arr, b2d)

    out = out_nhwc[:, :H, :, :Cout]          # drop H / Cout padding (fuses with transpose)
    return jnp.transpose(out, (0, 3, 1, 2))


if __name__ == "__main__":
    key = jax.random.PRNGKey(0)
    B, Cin, Cout, H, W = 2, 4, 8, 16, 16

    kx, kw, kb = jax.random.split(key, 3)
    x = jax.random.normal(kx, (B, Cin, H, W), dtype=jnp.float32)
    # Deterministic parameter init (same shapes as nn.Conv2d(Cin, Cout, 3)).
    fan_in = Cin * 3 * 3
    bound = 1.0 / (fan_in ** 0.5)
    weight = jax.random.uniform(kw, (Cout, Cin, 3, 3),
                                minval=-bound, maxval=bound, dtype=jnp.float32)
    bias = jax.random.uniform(kb, (Cout,),
                              minval=-bound, maxval=bound, dtype=jnp.float32)

    # Reference: pad + 3x3 VALID conv via XLA.
    def ref_conv(xp):
        return jax.lax.conv_general_dilated(
            xp, weight, window_strides=(1, 1), padding="VALID",
            dimension_numbers=("NCHW", "OIHW", "NCHW")) + bias[None, :, None, None]

    out_refl = jax.block_until_ready(conv3x3_pallas(x, weight, bias, use_refl=True))
    out_zero = jax.block_until_ready(conv3x3_pallas(x, weight, bias, use_refl=False))
    ref_refl = ref_conv(jnp.pad(x, ((0, 0), (0, 0), (1, 1), (1, 1)), mode="reflect"))
    ref_zero = ref_conv(jnp.pad(x, ((0, 0), (0, 0), (1, 1), (1, 1)), mode="constant"))
    assert out_refl.shape == (B, Cout, H, W)
    assert jnp.allclose(out_refl, ref_refl, atol=1e-4, rtol=1e-4)
    assert jnp.allclose(out_zero, ref_zero, atol=1e-4, rtol=1e-4)

    # Non-divisible H exercises the fused H-padding path (short last tile).
    x_odd = x[:, :, :13, :]
    out_odd = jax.block_until_ready(conv3x3_pallas(x_odd, weight, bias, use_refl=True))
    ref_odd = ref_conv(jnp.pad(x_odd, ((0, 0), (0, 0), (1, 1), (1, 1)), mode="reflect"))
    assert out_odd.shape == (B, Cout, 13, W)
    assert jnp.allclose(out_odd, ref_odd, atol=1e-4, rtol=1e-4)

    print("KERNEL_OK")
</pallas_src>

<mosaic_0001>
module attributes {stable_mosaic.version = 11 : i64} {
  func.func @_conv3x3_kernel(%arg0: i32, %arg1: i32, %arg2: memref<1x8x16x4xf32, #tpu.memory_space<vmem>>, %arg3: memref<1x1x16x4xf32, #tpu.memory_space<vmem>>, %arg4: memref<1x1x16x4xf32, #tpu.memory_space<vmem>>, %arg5: memref<36x128xf32, #tpu.memory_space<vmem>>, %arg6: memref<1x128xf32, #tpu.memory_space<vmem>>, %arg7: memref<1x8x16x128xf32, #tpu.memory_space<vmem>>) attributes {dimension_semantics = [#tpu.dimension_semantics<parallel>, #tpu.dimension_semantics<parallel>], iteration_bounds = array<i64: 2, 2>, scalar_prefetch = 0 : i64, scratch_operands = 0 : i64, tpu.core_type = #tpu.core_type<tc>, window_params = [{transform_indices = @transform_0, window_bounds = array<i64: 1, 8, 16, 4>}, {transform_indices = @transform_1, window_bounds = array<i64: 1, 1, 16, 4>}, {transform_indices = @transform_2, window_bounds = array<i64: 1, 1, 16, 4>}, {pipeline_mode = #tpu.pipeline_mode<synchronous>, transform_indices = @transform_3, window_bounds = array<i64: 36, 128>}, {pipeline_mode = #tpu.pipeline_mode<synchronous>, transform_indices = @transform_4, window_bounds = array<i64: 1, 128>}, {transform_indices = @transform_5, window_bounds = array<i64: 1, 8, 16, 128>}]} {
    %c0 = arith.constant 0 : index
    %c0_0 = arith.constant 0 : index
    %c0_1 = arith.constant 0 : index
    %c0_2 = arith.constant 0 : index
    %0 = vector.load %arg3[%c0, %c0_0, %c0_1, %c0_2] : memref<1x1x16x4xf32, #tpu.memory_space<vmem>>, vector<1x1x16x4xf32>
    %1 = vector.shape_cast %0 : vector<1x1x16x4xf32> to vector<1x16x4xf32>
    %c0_3 = arith.constant 0 : index
    %c0_4 = arith.constant 0 : index
    %c0_5 = arith.constant 0 : index
    %c0_6 = arith.constant 0 : index
    %2 = vector.load %arg4[%c0_3, %c0_4, %c0_5, %c0_6] : memref<1x1x16x4xf32, #tpu.memory_space<vmem>>, vector<1x1x16x4xf32>
    %3 = vector.shape_cast %2 : vector<1x1x16x4xf32> to vector<1x16x4xf32>
    %c0_7 = arith.constant 0 : index
    %c0_8 = arith.constant 0 : index
    %c0_9 = arith.constant 0 : index
    %c0_10 = arith.constant 0 : index
    %4 = vector.load %arg2[%c0_7, %c0_8, %c0_9, %c0_10] : memref<1x8x16x4xf32, #tpu.memory_space<vmem>>, vector<1x8x16x4xf32>
    %5 = vector.shape_cast %4 : vector<1x8x16x4xf32> to vector<8x16x4xf32>
    %6 = tpu.concatenate %1, %5, %3 in 0 : vector<1x16x4xf32>, vector<8x16x4xf32>, vector<1x16x4xf32> -> vector<10x16x4xf32>
    %7 = vector.extract_strided_slice %6 {offsets = [0, 1, 0], sizes = [10, 1, 4], strides = [1, 1, 1]} : vector<10x16x4xf32> to vector<10x1x4xf32>
    %8 = vector.extract_strided_slice %6 {offsets = [0, 14, 0], sizes = [10, 1, 4], strides = [1, 1, 1]} : vector<10x16x4xf32> to vector<10x1x4xf32>
    %9 = tpu.concatenate %7, %6, %8 in 1 : vector<10x1x4xf32>, vector<10x16x4xf32>, vector<10x1x4xf32> -> vector<10x18x4xf32>
    %10 = vector.extract_strided_slice %9 {offsets = [0, 0, 0], sizes = [8, 16, 4], strides = [1, 1, 1]} : vector<10x18x4xf32> to vector<8x16x4xf32>
    %11 = vector.extract_strided_slice %9 {offsets = [0, 1, 0], sizes = [8, 16, 4], strides = [1, 1, 1]} : vector<10x18x4xf32> to vector<8x16x4xf32>
    %12 = vector.extract_strided_slice %9 {offsets = [0, 2, 0], sizes = [8, 16, 4], strides = [1, 1, 1]} : vector<10x18x4xf32> to vector<8x16x4xf32>
    %13 = vector.extract_strided_slice %9 {offsets = [1, 0, 0], sizes = [8, 16, 4], strides = [1, 1, 1]} : vector<10x18x4xf32> to vector<8x16x4xf32>
    %14 = vector.extract_strided_slice %9 {offsets = [1, 1, 0], sizes = [8, 16, 4], strides = [1, 1, 1]} : vector<10x18x4xf32> to vector<8x16x4xf32>
    %15 = vector.extract_strided_slice %9 {offsets = [1, 2, 0], sizes = [8, 16, 4], strides = [1, 1, 1]} : vector<10x18x4xf32> to vector<8x16x4xf32>
    %16 = vector.extract_strided_slice %9 {offsets = [2, 0, 0], sizes = [8, 16, 4], strides = [1, 1, 1]} : vector<10x18x4xf32> to vector<8x16x4xf32>
    %17 = vector.extract_strided_slice %9 {offsets = [2, 1, 0], sizes = [8, 16, 4], strides = [1, 1, 1]} : vector<10x18x4xf32> to vector<8x16x4xf32>
    %18 = vector.extract_strided_slice %9 {offsets = [2, 2, 0], sizes = [8, 16, 4], strides = [1, 1, 1]} : vector<10x18x4xf32> to vector<8x16x4xf32>
    %19 = tpu.concatenate %10, %11, %12, %13, %14, %15, %16, %17, %18 in 2 : vector<8x16x4xf32>, vector<8x16x4xf32>, vector<8x16x4xf32>, vector<8x16x4xf32>, vector<8x16x4xf32>, vector<8x16x4xf32>, vector<8x16x4xf32>, vector<8x16x4xf32>, vector<8x16x4xf32> -> vector<8x16x36xf32>
    %20 = vector.shape_cast %19 : vector<8x16x36xf32> to vector<128x36xf32>
    %c0_11 = arith.constant 0 : index
    %c0_12 = arith.constant 0 : index
    %21 = vector.load %arg5[%c0_11, %c0_12] : memref<36x128xf32, #tpu.memory_space<vmem>>, vector<36x128xf32>
    %cst = arith.constant dense<0.000000e+00> : vector<128x128xf32>
    %22 = tpu.matmul %20, %21, %cst {dimension_numbers = #tpu.dot_dimension_numbers<[1], [0], [0], [1], [0, 0, 1, 1], [], []>} : vector<128x36xf32>, vector<36x128xf32>, vector<128x128xf32> -> vector<128x128xf32>
    %c0_13 = arith.constant 0 : index
    %c0_14 = arith.constant 0 : index
    %23 = vector.load %arg6[%c0_13, %c0_14] : memref<1x128xf32, #tpu.memory_space<vmem>>, vector<1x128xf32>
    %24 = vector.broadcast %23 : vector<1x128xf32> to vector<128x128xf32>
    %25 = arith.addf %22, %24 : vector<128x128xf32>
    %26 = vector.shape_cast %25 : vector<128x128xf32> to vector<1x8x16x128xf32>
    %c0_15 = arith.constant 0 : index
    %c0_16 = arith.constant 0 : index
    %c0_17 = arith.constant 0 : index
    %c0_18 = arith.constant 0 : index
    %27 = vector.load %arg7[%c0_15, %c0_16, %c0_17, %c0_18] : memref<1x8x16x128xf32, #tpu.memory_space<vmem>>, vector<1x8x16x128xf32>
    tpu.vector_store %arg7[%c0_15, %c0_16, %c0_17, %c0_18], %26 {strides = array<i32>} : memref<1x8x16x128xf32, #tpu.memory_space<vmem>>, vector<1x8x16x128xf32>,
    return
  }
  func.func @transform_0(%arg0: i32, %arg1: i32) -> (i32, i32, i32, i32) {
    %c0_i32 = arith.constant 0 : i32
    %c0_i32_0 = arith.constant 0 : i32
    %c0_i32_1 = arith.constant 0 : i32
    return %arg0, %arg1, %c0_i32, %c0_i32_0 : i32, i32, i32, i32
  }
  func.func @transform_1(%arg0: i32, %arg1: i32) -> (i32, i32, i32, i32) {
    %c0_i32 = arith.constant 0 : i32
    %0 = arith.cmpi eq, %arg1, %c0_i32 : i32
    %c8_i32 = arith.constant 8 : i32
    %1 = arith.muli %arg1, %c8_i32 : i32
    %c1_i32 = arith.constant 1 : i32
    %2 = arith.subi %1, %c1_i32 : i32
    %c1_i32_0 = arith.constant 1 : i32
    %3 = arith.select %0, %c1_i32_0, %2 : i32
    %c0_i32_1 = arith.constant 0 : i32
    %c0_i32_2 = arith.constant 0 : i32
    %c0_i32_3 = arith.constant 0 : i32
    return %arg0, %3, %c0_i32_1, %c0_i32_2 : i32, i32, i32, i32
  }
  func.func @transform_2(%arg0: i32, %arg1: i32) -> (i32, i32, i32, i32) {
    %c1_i32 = arith.constant 1 : i32
    %0 = arith.cmpi eq, %arg1, %c1_i32 : i32
    %c1_i32_0 = arith.constant 1 : i32
    %1 = arith.addi %arg1, %c1_i32_0 : i32
    %c8_i32 = arith.constant 8 : i32
    %2 = arith.muli %1, %c8_i32 : i32
    %c14_i32 = arith.constant 14 : i32
    %3 = arith.select %0, %c14_i32, %2 : i32
    %c0_i32 = arith.constant 0 : i32
    %c0_i32_1 = arith.constant 0 : i32
    %c0_i32_2 = arith.constant 0 : i32
    return %arg0, %3, %c0_i32, %c0_i32_1 : i32, i32, i32, i32
  }
  func.func @transform_3(%arg0: i32, %arg1: i32) -> (i32, i32) {
    %c0_i32 = arith.constant 0 : i32
    %c0_i32_0 = arith.constant 0 : i32
    %c0_i32_1 = arith.constant 0 : i32
    return %c0_i32, %c0_i32_0 : i32, i32
  }
  func.func @transform_4(%arg0: i32, %arg1: i32) -> (i32, i32) {
    %c0_i32 = arith.constant 0 : i32
    %c0_i32_0 = arith.constant 0 : i32
    %c0_i32_1 = arith.constant 0 : i32
    return %c0_i32, %c0_i32_0 : i32, i32
  }
  func.func @transform_5(%arg0: i32, %arg1: i32) -> (i32, i32, i32, i32) {
    %c0_i32 = arith.constant 0 : i32
    %c0_i32_0 = arith.constant 0 : i32
    %c0_i32_1 = arith.constant 0 : i32
    return %arg0, %arg1, %c0_i32, %c0_i32_0 : i32, i32, i32, i32
  }
}

</mosaic_0001>

<bundles_post_ra>
// kernel: tpu_custom_call.1
= control target key start
LH: loop header
LB: loop body
LE: loop exit
PB: predicated region body
PF: predicated region fallthrough
CT: control target
= control target key end

     0   :  { %10 = vsyncpa [#allocation3], 0  ;;  %s2782_s0 = inlined_call_operand.vmem [shape: f32[2,16,16,4], index: 0, kind: input, shape index: {}]   ;;  %s2783_s1 = inlined_call_operand.vmem [shape: f32[2,16,16,4], index: 1, kind: input, shape index: {}]   ;;  %s2784_s2 = inlined_call_operand.vmem [shape: f32[2,16,16,4], index: 2, kind: input, shape index: {}]   ;;  %s2785_s3 = inlined_call_operand.vmem [shape: f32[36,128], index: 3, kind: input, shape index: {}]   ;;  %s2786_s4 = inlined_call_operand.vmem [shape: f32[1,128], index: 4, kind: input, shape index: {}]   ;;  %s2787_s5 = inlined_call_operand.hbm [shape: f32[2,16,16,128], index: 5, kind: output, shape index: {}]  }
   0x1   :  { %12 = vsyncpa [#allocation3 + $0x1], 0  ;;  %s1894_s18 = smov 0   ;;  %s1896_s19 = smov 0  }
   0x2   :  { %s1898_s20 = smov 0   ;;  %s1900_s21 = smov 0  }
   0x3   :  { %s1902_s22 = smov 0   ;;  %s1904_s23 = smov 0  }
   0x4   :  { %s1906_s24 = smov 0   ;;  %s1908_s25 = smov 0  }
   0x5 LB: > { %s1552_s26 = sadd.s32 4294967295, %s1852_s25   ;;  %s1553_s27 = sadd.s32 4294967294, %s1852_s25   ;;  %s1852_s25 = sphi %s1908_s25, %s18_s25   ;;  %s1848_s24 = sphi %s1906_s24, %s2835_s24   ;;  %s1844_s23 = sphi %s1904_s23, %s2834_s23   ;;  %s1840_s22 = sphi %s1902_s22, %s2833_s22   ;;  %s1836_s21 = sphi %s1900_s21, %s2832_s21   ;;  %s1832_s20 = sphi %s1898_s20, %s2831_s20   ;;  %s1828_s19 = sphi %s1896_s19, %s2830_s19   ;;  %s1824_s18 = sphi %s1894_s18, %s2829_s18  }
   0x6   : > { %s27_s28 = sadd.s32 1, %s1844_s23  ;;  %s30_s29 = sadd.s32 1, %s1848_s24 }
   0x7   : > { %p28_p0 = scmp.ge.s32.totalorder %s27_s28, 2  ;;  %p191_p1 = scmp.ne.s32.totalorder %s1832_s20, %s1828_s19 }
   0x8   : > { %p192_p2 = scmp.eq.s32.totalorder %s1552_s26, 3  ;;  %p197_p5 = scmp.ne.s32.totalorder %s1828_s19, %s1824_s18 }
   0x9   : > { %s2837_s28 = smov (%p28_p0, %s27_s28), 0  ;;  %s2839_s29 = smov (!%p28_p0, %s30_s29), %s1848_s24 }
   0xa   : > { %s177_s30 = ssub.s32 %s1844_s23, %s2837_s28  ;;  %p1945_p3 = por %p192_p2, %p191_p1 }
   0xb   : > { %p32_p4 = scmp.ge.s32.totalorder %s2839_s29, 2  ;;  %p198_p6 = scmp.eq.s32.totalorder %s1553_s27, 3 }
   0xc   : > { %p1562_p7 = scmp.ge.s32.totalorder %s1852_s25, 1  ;;  %p276_p9 = scmp.lt.s32.totalorder %s1852_s25, 5 }
   0xd   : > { %s2841_s29 = smov (%p32_p4, %s2839_s29), 0  ;;  %p1954_p8 = por %p198_p6, %p197_p5 }
   0xe   : > { %s176_s8 = ssub.s32 %s1848_s24, %s2841_s29  ;;  %s181_s9 = sadd.s32 1, %s1832_s20 }
   0xf   : > { %s178_s10 = sor.u32 %s177_s30, %s176_s8  ;;  %p277_p10 = pnand %p1562_p7, %p276_p9 }
  0x10   : > { %p179_p11 = scmp.eq.s32.totalorder %s178_s10, 0 }
  0x11   : > { %280 = sbr.rel (%p277_p10) target bundleno = 637 (0x27d), region = 40 }
  0x12   : > { %s1963_s11 = scalar_select %p179_p11, %s1832_s20, %s181_s9  }
  0x18   : > { %s1966_s12 = sshll.u32 %s1836_s21, 3  ;;  %p336_p12 = scmp.lt.s32.totalorder %s1840_s22, 1  ;;  %vm441_vm0 = vcmask 1040384   ;;  %vm556_vm1 = vcmask 1046528   ;;  %vm645_vm2 = vcmask 1045504   ;;  %vm1243_vm3 = vcmask 1043456  }
  0x19   : > { %p338_p13 = scmp.lt.s32.totalorder %s1966_s12, 15  ;;  %p346_p0 = scmp.eq.s32.totalorder %s1836_s21, 0  ;;  %vm1046_vm4 = vcmask 31744   ;;  %vm1063_vm5 = vcmask 64512   ;;  %vm1080_vm6 = vcmask 97280   ;;  %vm1097_vm7 = vcmask 130048  }
  0x1a   : > { %s337_s13 = scalar_select %p336_p12, %s1840_s22, 1  ;;  %vm1114_vm8 = vcmask 162816   ;;  %vm1131_vm9 = vcmask 195584   ;;  %vm1148_vm10 = vcmask 228352   ;;  %vm1165_vm11 = vcmask 261120  }
  0x1b   : > { %s339_s14 = scalar_select %p338_p13, %s1966_s12, 15  ;;  %vm1194_vm12 = vcmask 293888  }
  0x1c   : > { %s1972_s15 = sshll.u32 %s337_s13, 5  ;;  %s1569_s27 = sadd.s32 4294967295, %s1966_s12 }
  0x1d   : > { %s1565_s16 = sshll.u32 %s339_s14, 1  ;;  %s2843_s27 = smov (%p346_p0, %s1569_s27), 1 }
  0x1e   : > { %s342_s17 = sadd.s32 %s1972_s15, %s1565_s16  ;;  %p352_p1 = scmp.lt.s32.totalorder %s2843_s27, 15 }
  0x1f   : > { %s1567_s26 = sshll.u32 %s342_s17, 3  ;;  %s2792_s10 = smov 12  }
  0x20   : > { %s1980_s9 = scalar_lea.vmem %s2782_s0, %s1567_s26  ;;  %s2845_s27 = smov (!%p352_p1, %s2843_s27), 15 }
  0x21   : > { %v1983_v0 = vld [vmem:[%s1980_s9 + $0x40] sm:$0xff]  ;;  %v391_v2 = vld [vmem:[%s1980_s9 + $0x30] sm:$0xff]  ;;  %v392_v7 = vld [vmem:[%s1980_s9 + $0x38] sm:$0xff]  ;;  %s1570_s13 = sshll.u32 %s2845_s27, 1  ;;  %s1855_s16 = smov 4  }
  0x22   : > { %v1986_v1 = vld [vmem:[%s1980_s9] sm:$0xff]  ;;  %v416_v3 = vrot.slane %v1983_v0, 1  ;;  %v457_v4 = vrot.slane %v1983_v0, 7  ;;  %v454_v8 = vrot.slane %v391_v2, 7  ;;  %v455_v9 = vrot.slane %v392_v7, 7  ;;  %s356_s14 = sadd.s32 %s1570_s13, %s1972_s15  ;;  %v394_v26 = vld [vmem:[%s1980_s9 + $0x48] sm:$0xff] }
  0x23   : > { %v412_v5 = vrot.slane %v1986_v1, 1  ;;  %v445_v6 = vrot.slane %v1986_v1, 7  ;;  %v504_v10 = vrot.slane %v392_v7, 5  ;;  %v415_v11 = vrot.slane %v391_v2, 1  ;;  %s1572_s17 = sshll.u32 %s356_s14, 3  ;;  %s2790_s8 = smov 8  }
  0x24   : > { %v1997_v12 = vsel %vm441_vm0, %v416_v3, %v457_v4  ;;  %v2009_v14 = vsel %vm441_vm0, %v454_v8, %v455_v9  ;;  %s358_s30 = scalar_lea.vmem %s2783_s1, %s1572_s17  ;;  %v458_v33 = vrot.slane %v394_v26, 7  ;;  %v386_v44 = vld [vmem:[%s1980_s9 + $0x8] sm:$0xff]  ;;  %v505_v53 = vrot.slane %v394_v26, 5  ;;  %s1857_s13 = smov 16   ;;  %v396_v26 = vld [vmem:[%s1980_s9 + $0x58] sm:$0xff] }
  0x25   : > { %2806 = vst [vmem:[#allocation5_spill] sm:$0xff] %v1997_v12  ;;  %v2002_v13 = vsel %vm441_vm0, %v412_v5, %v445_v6  ;;  %751 = vrot.lane.b32.xlu1 %v1997_v12, %s2792_s10  ;;  %v534_v15 = vsel %vm441_vm0, %v455_v9, %v504_v10  ;;  %v2013_v16 = vsel %vm441_vm0, %v415_v11, %v454_v8  ;;  %v578_v17 = vrot.slane %v2009_v14, 1  ;;  %v381_v27 = vld [vmem:[%s358_s30] sm:$0xff]  ;;  %v382_v28 = vld [vmem:[%s358_s30 + $0x8] sm:$0xff]  ;;  %s1858_s14 = smov 20   ;;  %v395_v9 = vld [vmem:[%s1980_s9 + $0x50] sm:$0xff] }
  0x26   : > { %735 = vrot.lane.b32.xlu0 %v2002_v13, %s2792_s10  ;;  %v580_v18 = vrot.slane %v534_v15, 1  ;;  %v577_v19 = vrot.slane %v2013_v16, 1  ;;  %v666_v20 = vrot.slane %v2013_v16, 2  ;;  %v667_v21 = vrot.slane %v2009_v14, 2  ;;  %s2788_s17 = smov 24   ;;  %s1860_s26 = smov 28  }
  0x27   : > { %v669_v25 = vrot.slane %v534_v15, 2  ;;  %v411_v29 = vrot.slane %v381_v27, 1  ;;  %v442_v30 = vrot.slane %v381_v27, 7  ;;  %v443_v31 = vrot.slane %v382_v28, 7  ;;  %s2814_s30 = smov 24   ;;  %s2817_s27 = smov 12  }
  0x28   : > { %v2020_v22 = vsel %vm556_vm1, %v578_v17, %v580_v18  ;;  %v2023_v23 = vsel %vm556_vm1, %v577_v19, %v578_v17  ;;  %v2031_v24 = vsel %vm645_vm2, %v666_v20, %v667_v21  ;;  %v500_v32 = vrot.slane %v382_v28, 5  ;;  %v387_v18 = vld [vmem:[%s1980_s9 + $0x10] sm:$0xff]  ;;  %p363_p2 = scmp.eq.s32.totalorder %s1836_s21, 1 }
  0x29   : > { %615 = vrot.lane.b32.xlu1 %v2020_v22, %s1855_s16  ;;  %v2040_v34 = vsel %vm441_vm0, %v442_v30, %v443_v31  ;;  %v2043_v35 = vsel %vm441_vm0, %v411_v29, %v442_v30  ;;  %v2046_v36 = vsel %vm645_vm2, %v667_v21, %v669_v25  ;;  %v2063_v48 = vsel %vm441_vm0, %v457_v4, %v458_v33  ;;  %v388_v29 = vld [vmem:[%s1980_s9 + $0x18] sm:$0xff] }
  0x2a   : > { %613 = vrot.lane.b32.xlu0 %v2023_v23, %s1855_s16  ;;  %v530_v37 = vsel %vm441_vm0, %v443_v31, %v500_v32  ;;  %v557_v38 = vrot.slane %v2043_v35, 1  ;;  %v558_v39 = vrot.slane %v2040_v34, 1  ;;  %v646_v40 = vrot.slane %v2043_v35, 2 }
  0x2b   : > { %v647_v41 = vrot.slane %v2040_v34, 2  ;;  %v560_v42 = vrot.slane %v530_v37, 1  ;;  %v649_v47 = vrot.slane %v530_v37, 2  ;;  %v446_v49 = vrot.slane %v386_v44, 7 }
  0x2c   : > { %v559_v43 = vsel %vm556_vm1, %v557_v38, %v558_v39  ;;  %v582_v50 = vrot.slane %v1997_v12, 1  ;;  %v583_v51 = vrot.slane %v2063_v48, 1  ;;  %v562_v56 = vrot.slane %v2002_v13, 1 }
  0x2d   : > { %702 = vrot.lane.b32.xlu1 %v2031_v24, %s2790_s8  ;;  %v561_v45 = vsel %vm556_vm1, %v558_v39, %v560_v42  ;;  %v648_v46 = vsel %vm645_vm2, %v646_v40, %v647_v41  ;;  %v650_v52 = vsel %vm645_vm2, %v647_v41, %v649_v47  ;;  %v2073_v54 = vsel %vm441_vm0, %v445_v6, %v446_v49 }
  0x2e   : > { %597 = vrot.lane.b32.xlu0 %v559_v43, %s1855_s16  ;;  %v2079_v55 = vsel %vm556_vm1, %v582_v50, %v583_v51  ;;  %v563_v57 = vrot.slane %v2073_v54, 1  ;;  %v535_v58 = vsel %vm441_vm0, %v458_v33, %v505_v53  ;;  %v501_v59 = vrot.slane %v386_v44, 5  ;;  %v1183_v53 = vld [vmem:[%s2785_s3 + $0x8] sm:$0xff] }
  0x2f   : > { %2807 = vst [vmem:[#allocation6_spill] sm:$0xff] %v2079_v55  ;;  %v585_v60 = vrot.slane %v535_v58, 1  ;;  %v671_v0 = vrot.slane %v1997_v12, 2  ;;  %v672_v1 = vrot.slane %v2063_v48, 2  ;;  %v651_v5 = vrot.slane %v2002_v13, 2 }
  0x30   : > { %v564_v61 = vsel %vm556_vm1, %v562_v56, %v563_v57  ;;  %v531_v62 = vsel %vm441_vm0, %v446_v49, %v501_v59  ;;  %v652_v6 = vrot.slane %v2073_v54, 2  ;;  %v674_v8 = vrot.slane %v535_v58, 2 }
  0x31   : > { %704 = vrot.lane.b32.xlu1 %v2046_v36, %s2790_s8  ;;  %v2094_v63 = vsel %vm556_vm1, %v583_v51, %v585_v60  ;;  %v565_v2 = vrot.slane %v531_v62, 1  ;;  %v2102_v3 = vsel %vm645_vm2, %v671_v0, %v672_v1  ;;  %v417_v11 = vrot.slane %v395_v9, 1 }
  0x32   : > { %686 = vrot.lane.b32.xlu0 %v648_v46, %s2790_s8  ;;  %2808 = vst [vmem:[#allocation7_spill] sm:$0xff] %v2094_v63  ;;  %2809 = vst [vmem:[#allocation8_spill] sm:$0xff] %v2102_v3  ;;  %v653_v7 = vsel %vm645_vm2, %v651_v5, %v652_v6  ;;  %v2119_v10 = vsel %vm645_vm2, %v672_v1, %v674_v8  ;;  %v460_v15 = vrot.slane %v395_v9, 7  ;;  %v654_v17 = vrot.slane %v531_v62, 2  ;;  %v1185_v62 = vld [vmem:[%s2785_s3 + $0x18] sm:$0xff]  ;;  %v397_v8 = vld [vmem:[%s1980_s9 + $0x60] sm:$0xff] }
  0x33   : > { %v566_v4 = vsel %vm556_vm1, %v563_v57, %v565_v2  ;;  %2810 = vst [vmem:[#allocation9_spill] sm:$0xff] %v2119_v10  ;;  %v413_v21 = vrot.slane %v387_v18, 1  ;;  %v448_v25 = vrot.slane %v387_v18, 7  ;;  %v461_v28 = vrot.slane %v396_v26, 7  ;;  %v1186_v2 = vld [vmem:[%s2785_s3 + $0x20] sm:$0xf] }
  0x34   : > { %v2126_v19 = vsel %vm441_vm0, %v417_v11, %v460_v15  ;;  %v655_v20 = vsel %vm645_vm2, %v652_v6, %v654_v17  ;;  %v449_v31 = vrot.slane %v388_v29, 7  ;;  %v506_v41 = vrot.slane %v396_v26, 5  ;;  %v398_v26 = vld [vmem:[%s1980_s9 + $0x68] sm:$0xff] }
  0x35   : > { %599 = vrot.lane.b32.xlu1 %v561_v45, %s1855_s16  ;;  %v2134_v27 = vsel %vm441_vm0, %v413_v21, %v448_v25  ;;  %v2142_v30 = vsel %vm441_vm0, %v460_v15, %v461_v28  ;;  %v587_v32 = vrot.slane %v2126_v19, 1  ;;  %v502_v44 = vrot.slane %v388_v29, 5  ;;  %v389_v15 = vld [vmem:[%s1980_s9 + $0x20] sm:$0xff] }
  0x36   : > { %688 = vrot.lane.b32.xlu0 %v650_v52, %s2790_s8  ;;  %v588_v33 = vrot.slane %v2142_v30, 1  ;;  %v2150_v37 = vsel %vm441_vm0, %v448_v25, %v449_v31  ;;  %v567_v39 = vrot.slane %v2134_v27, 1  ;;  %v536_v43 = vsel %vm441_vm0, %v461_v28, %v506_v41  ;;  %v1182_v52 = vld [vmem:[%s2785_s3] sm:$0xff] }
  0x37   : > { %2811 = vst [vmem:[#allocation10_spill] sm:$0xff] %v2150_v37  ;;  %v568_v40 = vrot.slane %v2150_v37, 1  ;;  %v590_v45 = vrot.slane %v536_v43, 1  ;;  %v532_v46 = vsel %vm441_vm0, %v449_v31, %v502_v44  ;;  %v676_v49 = vrot.slane %v2126_v19, 2 }
  0x38   : > { %v589_v38 = vsel %vm556_vm1, %v587_v32, %v588_v33  ;;  %v677_v50 = vrot.slane %v2142_v30, 2  ;;  %v570_v51 = vrot.slane %v532_v46, 1  ;;  %v1664_v57 = vpack.c.bf16 %v1183_v53, %v1182_v52  ;;  %v390_v32 = vld [vmem:[%s1980_s9 + $0x28] sm:$0xff] }
  0x39   : > { %753 = vrot.lane.b32.xlu1 %v2063_v48, %s2792_s10  ;;  %v569_v42 = vsel %vm556_vm1, %v567_v39, %v568_v40  ;;  %v591_v47 = vsel %vm556_vm1, %v588_v33, %v590_v45  ;;  %v656_v59 = vrot.slane %v2134_v27, 2  ;;  %v657_v60 = vrot.slane %v2150_v37, 2 }
  0x3a   : > { %737 = vrot.lane.b32.xlu0 %v2073_v54, %s2792_s10  ;;  %v678_v56 = vsel %vm645_vm2, %v676_v49, %v677_v50  ;;  %v571_v58 = vsel %vm556_vm1, %v568_v40, %v570_v51  ;;  %1665 = vmatprep.subr.bf16.mxu0 %v1664_v57  ;;  %v659_v6 = vrot.slane %v532_v46, 2  ;;  %v418_v9 = vrot.slane %v397_v8, 1 }
  0x3b   : > { %1672 = vmatprep.subr.bf16.mxu1 %v1664_v57  ;;  %1667 = vmatpush3.bf16.msra.mxu0 %v1664_v57  ;;  %v658_v1 = vsel %vm645_vm2, %v656_v59, %v657_v60  ;;  %v463_v11 = vrot.slane %v397_v8, 7  ;;  %v451_v21 = vrot.slane %v389_v15, 7  ;;  %v464_v31 = vrot.slane %v398_v26, 7 }
  0x3c   : > { %1675 = vmatpush3.bf16.msra.mxu1 %v1664_v57  ;;  %v452_v40 = vrot.slane %v390_v32, 7  ;;  %v507_v51 = vrot.slane %v398_v26, 5  ;;  %v503_v59 = vrot.slane %v390_v32, 5 }
  0x3d   : > { %805 = vrot.lane.b32.xlu1 %v2079_v55, %s1857_s13  ;;  %v2217_v17 = vsel %vm441_vm0, %v418_v9, %v463_v11  ;;  %v2241_v39 = vsel %vm441_vm0, %v463_v11, %v464_v31 }
  0x3e   : > { %789 = vrot.lane.b32.xlu0 %v564_v61, %s1857_s13  ;;  %2813 = vst [vmem:[#allocation11_spill] sm:$0xff] %v2217_v17  ;;  %2816 = vst [vmem:[#allocation13_spill] sm:$0xff] %v2241_v39  ;;  %v592_v41 = vrot.slane %v2217_v17, 1  ;;  %v2253_v45 = vsel %vm441_vm0, %v451_v21, %v452_v40  ;;  %v537_v57 = vsel %vm441_vm0, %v464_v31, %v507_v51 }
  0x3f   : > { %2818 = vst [vmem:[#allocation14_spill] sm:$0xff] %v2253_v45 }
  0x41   : > { %617 = vrot.lane.b32.xlu1 %v2079_v55, %s1855_s16 }
  0x42   : > { %601 = vrot.lane.b32.xlu0 %v564_v61, %s1855_s16  ;;  %v1184_v61 = vld [vmem:[%s2785_s3 + $0x10] sm:$0xff] }
  0x43   : > { %v1668_v0 = vpack.c.bf16 %v1185_v62, %v1184_v61 }
  0x45   : > { %807 = vrot.lane.b32.xlu1 %v2094_v63, %s1857_s13  ;;  %1669 = vmatprep.subr.bf16.mxu0 %v1668_v0 }
  0x46   : > { %791 = vrot.lane.b32.xlu0 %v566_v4, %s1857_s13  ;;  %1673 = vmatprep.subr.bf16.mxu1 %v1668_v0 }
  0x47   : > { %1671 = vmatpush3.bf16.msra.mxu0 %v1668_v0  ;;  %1676 = vmatpush3.bf16.msra.mxu1 %v1668_v0  ;;  %v533_v0 = vsel %vm441_vm0, %v452_v40, %v503_v59 }
  0x48   : > { %1638 = vmatprep.subr.msk.mxu0 %vm1243_vm3, %v1186_v2  ;;  %1674 = vmatprep.subr.msk.mxu1 %vm1243_vm3, %v1186_v2  ;;  %v664_v59 = vrot.slane %v533_v0, 2 }
  0x49   : > { %858 = vrot.lane.b32.xlu1 %v2102_v3, %s1858_s14 }
  0x4a   : > { %842 = vrot.lane.b32.xlu0 %v653_v7, %s1858_s14 }
  0x4b   : > { %1639 = vmatpush3.msk.msra.mxu0 %vm1243_vm3, %v1186_v2  ;;  %1677 = vmatpush3.msk.msra.mxu1 %vm1243_vm3, %v1186_v2  ;;  %v681_v2 = vrot.slane %v2217_v17, 2 }
  0x4d   : > { %619 = vrot.lane.b32.xlu1 %v2094_v63, %s1855_s16 }
  0x4e   : > { %603 = vrot.lane.b32.xlu0 %v566_v4, %s1855_s16  ;;  %v679_v4 = vrot.slane %v536_v43, 2 }
  0x50   : > { %v680_v5 = vsel %vm645_vm2, %v677_v50, %v679_v4  ;;  %v573_v50 = vrot.slane %v2253_v45, 1  ;;  %v682_v4 = vrot.slane %v2241_v39, 2 }
  0x51   : > { %706 = vrot.lane.b32.xlu1 %v2102_v3, %s2790_s8 }
  0x52   : > { %690 = vrot.lane.b32.xlu0 %v653_v7, %s2790_s8  ;;  %v660_v7 = vsel %vm645_vm2, %v657_v60, %v659_v6  ;;  %v595_v60 = vrot.slane %v537_v57, 1  ;;  %v575_v6 = vrot.slane %v533_v0, 1  ;;  %v683_v8 = vsel %vm645_vm2, %v681_v2, %v682_v4 }
  0x54   : > { %v576_v9 = vsel %vm556_vm1, %v573_v50, %v575_v6  ;;  %v399_v6 = vld [vmem:[%s1980_s9 + $0x70] sm:$0xff] }
  0x55   : > { %860 = vrot.lane.b32.xlu1 %v2119_v10, %s1858_s14 }
  0x56   : > { %844 = vrot.lane.b32.xlu0 %v655_v20, %s1858_s14 }
  0x59   : > { %907 = vrot.lane.b32.xlu1 %v2126_v19, %s2788_s17 }
  0x5a   : > { %891 = vrot.lane.b32.xlu0 %v2134_v27, %s2788_s17 }
  0x5d   : > { %708 = vrot.lane.b32.xlu1 %v2119_v10, %s2790_s8 }
  0x5e   : > { %692 = vrot.lane.b32.xlu0 %v655_v20, %s2790_s8  ;;  %v414_v20 = vrot.slane %v389_v15, 1 }
  0x60   : > { %v2228_v28 = vsel %vm441_vm0, %v414_v20, %v451_v21  ;;  %v662_v20 = vrot.slane %v2253_v45, 2 }
  0x61   : > { %755 = vrot.lane.b32.xlu1 %v2126_v19, %s2792_s10  ;;  %2815 = vst [vmem:[#allocation12_spill] sm:$0xff] %v2228_v28  ;;  %v572_v49 = vrot.slane %v2228_v28, 1  ;;  %v661_v15 = vrot.slane %v2228_v28, 2 }
  0x62   : > { %739 = vrot.lane.b32.xlu0 %v2134_v27, %s2792_s10 }
  0x63   : > { %v574_v53 = vsel %vm556_vm1, %v572_v49, %v573_v50  ;;  %v663_v26 = vsel %vm645_vm2, %v661_v15, %v662_v20  ;;  %v419_v15 = vrot.slane %v399_v6, 1 }
  0x65   : > { %909 = vrot.lane.b32.xlu1 %v2142_v30, %s2788_s17 }
  0x66   : > { %893 = vrot.lane.b32.xlu0 %v2150_v37, %s2788_s17  ;;  %s2812_s17 = smov 8  }
  0x69   : > { %961 = vrot.lane.b32.xlu1 %v589_v38, %s1860_s26 }
  0x6a   : > { %945 = vrot.lane.b32.xlu0 %v569_v42, %s1860_s26 }
  0x6d   : > { %757 = vrot.lane.b32.xlu1 %v2142_v30, %s2792_s10 }
  0x6e   : > { %741 = vrot.lane.b32.xlu0 %v2150_v37, %s2792_s10  ;;  %s1861_s10 = smov 32  }
  0x71   : > { %809 = vrot.lane.b32.xlu1 %v589_v38, %s1857_s13 }
  0x72   : > { %793 = vrot.lane.b32.xlu0 %v569_v42, %s1857_s13 }
  0x75   : > { %963 = vrot.lane.b32.xlu1 %v591_v47, %s1860_s26 }
  0x76   : > { %947 = vrot.lane.b32.xlu0 %v571_v58, %s1860_s26 }
  0x79   : > { %1014 = vrot.lane.b32.xlu1 %v678_v56, %s1861_s10 }
  0x7a   : > { %998 = vrot.lane.b32.xlu0 %v658_v1, %s1861_s10 }
  0x7d   : > { %621 = vrot.lane.b32.xlu1 %v589_v38, %s1855_s16 }
  0x7e   : > { %605 = vrot.lane.b32.xlu0 %v569_v42, %s1855_s16  ;;  %v593_v42 = vrot.slane %v2241_v39, 1 }
  0x80   : > { %v594_v46 = vsel %vm556_vm1, %v592_v41, %v593_v42 }
  0x81   : > { %811 = vrot.lane.b32.xlu1 %v591_v47, %s1857_s13 }
  0x82   : > { %795 = vrot.lane.b32.xlu0 %v571_v58, %s1857_s13 }
  0x85   : > { %862 = vrot.lane.b32.xlu1 %v678_v56, %s1858_s14 }
  0x86   : > { %846 = vrot.lane.b32.xlu0 %v658_v1, %s1858_s14 }
  0x89   : > { %1016 = vrot.lane.b32.xlu1 %v680_v5, %s1861_s10 }
  0x8a   : > { %1000 = vrot.lane.b32.xlu0 %v660_v7, %s1861_s10 }
  0x8d   : > { %623 = vrot.lane.b32.xlu1 %v591_v47, %s1855_s16 }
  0x8e   : > { %607 = vrot.lane.b32.xlu0 %v571_v58, %s1855_s16 }
  0x91   : > { %710 = vrot.lane.b32.xlu1 %v678_v56, %s2812_s17 }
  0x92   : > { %694 = vrot.lane.b32.xlu0 %v658_v1, %s2812_s17  ;;  %v596_v1 = vsel %vm556_vm1, %v593_v42, %v595_v60  ;;  %v684_v42 = vrot.slane %v537_v57, 2 }
  0x95   : > { %864 = vrot.lane.b32.xlu1 %v680_v5, %s1858_s14 }
  0x96   : > { %848 = vrot.lane.b32.xlu0 %v660_v7, %s1858_s14 }
  0x97   : > { %v2219_v18 = vpop.permute.xlu1 %751 }
  0x98   : > { %v2221_v25 = vpop.permute.xlu0 %735 }
  0x99   : > { %911 = vrot.lane.b32.xlu1 %v2217_v17, %s2814_s30 }
  0x9a   : > { %895 = vrot.lane.b32.xlu0 %v2228_v28, %s2814_s30 }
  0x9b   : > { %v2230_v29 = vpop.permute.xlu1 %615 }
  0x9c   : > { %v2236_v33 = vpop.permute.xlu0 %613 }
  0x9d   : > { %712 = vrot.lane.b32.xlu1 %v680_v5, %s2812_s17  ;;  %v1055_v63 = vsel %vm1046_vm4, %v2013_v16, %v2236_v33 }
  0x9e   : > { %696 = vrot.lane.b32.xlu0 %v660_v7, %s2812_s17 }
  0x9f   : > { %v2238_v38 = vpop.permute.xlu1 %702 }
  0xa0   : > { %v2250_v44 = vpop.permute.xlu0 %597  ;;  %v1072_v37 = vsel %vm1063_vm5, %v1055_v63, %v2238_v38 }
  0xa1   : > { %759 = vrot.lane.b32.xlu1 %v2217_v17, %s2817_s27  ;;  %v1089_v63 = vsel %vm1080_vm6, %v1072_v37, %v2219_v18 }
  0xa2   : > { %743 = vrot.lane.b32.xlu0 %v2228_v28, %s2817_s27  ;;  %v400_v28 = vld [vmem:[%s1980_s9 + $0x78] sm:$0xff]  ;;  %s1607_s9 = sadd.s32 8, %s1966_s12 }
  0xa3   : > { %v2248_v43 = vpop.permute.xlu1 %704  ;;  %v508_v38 = vrot.slane %v400_v28, 5  ;;  %s2847_s9 = smov (%p363_p2, %s1607_s9), 14 }
  0xa4   : > { %v2264_v52 = vpop.permute.xlu0 %686  ;;  %p369_p4 = scmp.lt.s32.totalorder %s2847_s9, 15 }
  0xa5   : > { %913 = vrot.lane.b32.xlu1 %v2241_v39, %s2814_s30 }
  0xa6   : > { %897 = vrot.lane.b32.xlu0 %v2253_v45, %s2814_s30  ;;  %s2849_s9 = smov (!%p369_p4, %s2847_s9), 15 }
  0xa7   : > { %v2260_v47 = vpop.permute.xlu1 %599  ;;  %s1574_s12 = sshll.u32 %s2849_s9, 1 }
  0xa8   : > { %v2273_v58 = vpop.permute.xlu0 %688 }
  0xa9   : > { %965 = vrot.lane.b32.xlu1 %v594_v46, %s1860_s26 }
  0xaa   : > { %949 = vrot.lane.b32.xlu0 %v574_v53, %s1860_s26 }
  0xab   : > { %v2270_v56 = vpop.permute.xlu1 %753 }
  0xac   : > { %v2280_v62 = vpop.permute.xlu0 %737 }
  0xad   : > { %761 = vrot.lane.b32.xlu1 %v2241_v39, %s2817_s27 }
  0xae   : > { %745 = vrot.lane.b32.xlu0 %v2253_v45, %s2817_s27 }
  0xaf   : > { %v2278_v61 = vpop.permute.xlu1 %805 }
  0xb0   : > { %v2291_v7 = vpop.permute.xlu0 %789 }
  0xb1   : > { %813 = vrot.lane.b32.xlu1 %v594_v46, %s1857_s13 }
  0xb2   : > { %797 = vrot.lane.b32.xlu0 %v574_v53, %s1857_s13 }
  0xb3   : > { %v2289_v5 = vpop.permute.xlu1 %617 }
  0xb4   : > { %v2301_v21 = vpop.permute.xlu0 %601  ;;  %v1057_v10 = vsel %vm1046_vm4, %v1997_v12, %v2289_v5 }
  0xb5   : > { %967 = vrot.lane.b32.xlu1 %v596_v1, %s1860_s26  ;;  %v1049_v33 = vsel %vm1046_vm4, %v2002_v13, %v2301_v21  ;;  %v1047_v13 = vsel %vm1046_vm4, %v2043_v35, %v2250_v44  ;;  %v1106_v21 = vsel %vm1097_vm7, %v1089_v63, %v2278_v61 }
  0xb6   : > { %951 = vrot.lane.b32.xlu0 %v576_v9, %s1860_s26  ;;  %v1064_v37 = vsel %vm1063_vm5, %v1047_v13, %v2264_v52 }
  0xb7   : > { %v2297_v11 = vpop.permute.xlu1 %807  ;;  %v1081_v61 = vsel %vm1080_vm6, %v1064_v37, %v2221_v25 }
  0xb8   : > { %v2308_v32 = vpop.permute.xlu0 %791 }
  0xb9   : > { %1018 = vrot.lane.b32.xlu1 %v683_v8, %s1861_s10 }
  0xba   : > { %1002 = vrot.lane.b32.xlu0 %v663_v26, %s1861_s10 }
  0xbb   : > { %v2306_v31 = vpop.permute.xlu1 %858 }
  0xbc   : > { %v2314_v41 = vpop.permute.xlu0 %842  ;;  %v1123_v18 = vsel %vm1114_vm8, %v1106_v21, %v2306_v31 }
  0xbd   : > { %625 = vrot.lane.b32.xlu1 %v594_v46, %s1855_s16  ;;  %v685_v46 = vsel %vm645_vm2, %v682_v4, %v684_v42 }
  0xbe   : > { %609 = vrot.lane.b32.xlu0 %v574_v53, %s1855_s16  ;;  %v665_v53 = vsel %vm645_vm2, %v662_v20, %v664_v59  ;;  %v466_v20 = vrot.slane %v399_v6, 7 }
  0xbf   : > { %v2312_v40 = vpop.permute.xlu1 %619 }
  0xc0   : > { %v2318_v50 = vpop.permute.xlu0 %603 }
  0xc1   : > { %815 = vrot.lane.b32.xlu1 %v596_v1, %s1857_s13 }
  0xc2   : > { %799 = vrot.lane.b32.xlu0 %v576_v9, %s1857_s13 }
  0xc3   : > { %v707_v49 = vpop.permute.xlu1 %706 }
  0xc4   : > { %v691_v60 = vpop.permute.xlu0 %690 }
  0xc5   : > { %866 = vrot.lane.b32.xlu1 %v683_v8, %s1858_s14 }
  0xc6   : > { %850 = vrot.lane.b32.xlu0 %v663_v26, %s1858_s14 }
  0xc7   : > { %v2323_v51 = vpop.permute.xlu1 %860 }
  0xc8   : > { %v2330_v2 = vpop.permute.xlu0 %844 }
  0xc9   : > { %1020 = vrot.lane.b32.xlu1 %v685_v46, %s1861_s10 }
  0xca   : > { %1004 = vrot.lane.b32.xlu0 %v665_v53, %s1861_s10 }
  0xcb   : > { %v2328_v57 = vpop.permute.xlu1 %907 }
  0xcc   : > { %v2337_v0 = vpop.permute.xlu0 %891  ;;  %v1140_v35 = vsel %vm1131_vm9, %v1123_v18, %v2328_v57  ;;  %v1098_v57 = vsel %vm1097_vm7, %v1081_v61, %v2291_v7 }
  0xcd   : > { %627 = vrot.lane.b32.xlu1 %v596_v1, %s1855_s16  ;;  %v2346_v1 = vsel %vm441_vm0, %v419_v15, %v466_v20 }
  0xce   : > { %611 = vrot.lane.b32.xlu0 %v576_v9, %s1855_s16  ;;  %v467_v9 = vrot.slane %v400_v28, 7  ;;  %v784_v3 = vrot.slane %v2346_v1, 1  ;;  %v837_v63 = vrot.slane %v2346_v1, 2  ;;  %s373_s16 = sadd.s32 %s1574_s12, %s1972_s15  ;;  %s1608_s12 = sshll.u32 %s1836_s21, 4 }
  0xcf   : > { %v2334_v4 = vpop.permute.xlu1 %708  ;;  %s1576_s15 = sshll.u32 %s373_s16, 3  ;;  %s1598_s16 = sshll.u32 %s1840_s22, 5 }
  0xd0   : > { %v2341_v59 = vpop.permute.xlu0 %692  ;;  %v2362_v15 = vsel %vm441_vm0, %v466_v20, %v467_v9  ;;  %v2419_v52 = vsel %vm441_vm0, %v467_v9, %v508_v38  ;;  %s375_s9 = scalar_lea.vmem %s2784_s2, %s1576_s15  ;;  %s1422_s15 = sadd.s32 %s1608_s12, %s1598_s16 }
  0xd1   : > { %714 = vrot.lane.b32.xlu1 %v683_v8, %s2812_s17  ;;  %v785_v20 = vrot.slane %v2362_v15, 1  ;;  %v787_v25 = vrot.slane %v2419_v52, 1  ;;  %s1599_s8 = sshll.u32 %s1422_s15, 7 }
  0xd2   : > { %698 = vrot.lane.b32.xlu0 %v663_v26, %s2812_s17  ;;  %s2721_s21 = scalar_lea.hbm %s2787_s5, %s1599_s8 }
  0xd3   : > { %v756_v42 = vpop.permute.xlu1 %755 }
  0xd4   : > { %v740_v39 = vpop.permute.xlu0 %739 }
  0xd5   : > { %868 = vrot.lane.b32.xlu1 %v685_v46, %s1858_s14 }
  0xd6   : > { %852 = vrot.lane.b32.xlu0 %v665_v53, %s1858_s14 }
  0xd7   : > { %v2348_v45 = vpop.permute.xlu1 %909 }
  0xd8   : > { %v2354_v6 = vpop.permute.xlu0 %893 }
  0xd9   : > { %915 = vrot.lane.b32.xlu1 %v2346_v1, %s2814_s30 }
  0xda   : > { %899 = vrot.lane.b32.xlu0 %v2013_v16, %s2814_s30 }
  0xdb   : > { %v962_v8 = vpop.permute.xlu1 %961 }
  0xdc   : > { %v946_v17 = vpop.permute.xlu0 %945 }
  0xdd   : > { %716 = vrot.lane.b32.xlu1 %v685_v46, %s2812_s17  ;;  %v1074_v46 = vsel %vm1063_vm5, %v1057_v10, %v707_v49  ;;  %v786_v49 = vsel %vm556_vm1, %v784_v3, %v785_v20 }
  0xde   : > { %700 = vrot.lane.b32.xlu0 %v665_v53, %s2812_s17  ;;  %v1091_v5 = vsel %vm1080_vm6, %v1074_v46, %v756_v42  ;;  %v1115_v42 = vsel %vm1114_vm8, %v1098_v57, %v2314_v41 }
  0xdf   : > { %v2359_v26 = vpop.permute.xlu1 %757 }
  0xe0   : > { %v2379_v12 = vpop.permute.xlu0 %741 }
  0xe1   : > { %763 = vrot.lane.b32.xlu1 %v2346_v1, %s2817_s27  ;;  %v1056_v1 = vsel %vm1046_vm4, %v2009_v14, %v2230_v29 }
  0xe2   : > { %747 = vrot.lane.b32.xlu0 %v2013_v16, %s2817_s27 }
  0xe3   : > { %v810_v55 = vpop.permute.xlu1 %809 }
  0xe4   : > { %v2382_v10 = vsel %vm1097_vm7, %v1091_v5, %v810_v55  ;;  %v1066_v55 = vsel %vm1063_vm5, %v1049_v33, %v691_v60  ;;  %v794_v3 = vpop.permute.xlu0 %793  ;;  %v1058_v5 = vsel %vm1046_vm4, %v2063_v48, %v2312_v40 }
  0xe5   : > { %917 = vrot.lane.b32.xlu1 %v2362_v15, %s2814_s30  ;;  %v1083_v16 = vsel %vm1080_vm6, %v1066_v55, %v740_v39  ;;  %v1157_v39 = vsel %vm1148_vm10, %v1140_v35, %v962_v8  ;;  %v1132_v8 = vsel %vm1131_vm9, %v1115_v42, %v2337_v0  ;;  %v1075_v41 = vsel %vm1063_vm5, %v1058_v5, %v2334_v4  ;;  %v383_v35 = vld [vmem:[%s375_s9] sm:$0xff] }
  0xe6   : > { %v2410_v28 = vsel %vm1097_vm7, %v1083_v16, %v794_v3  ;;  %901 = vrot.lane.b32.xlu0 %v2009_v14, %s2814_s30  ;;  %v1149_v7 = vsel %vm1148_vm10, %v1132_v8, %v946_v17  ;;  %v838_v0 = vrot.slane %v2362_v15, 2  ;;  %v788_v17 = vsel %vm556_vm1, %v785_v20, %v787_v25 }
  0xe7   : > { %v2395_v53 = vpop.permute.xlu1 %963  ;;  %v1092_v40 = vsel %vm1080_vm6, %v1075_v41, %v2359_v26  ;;  %v1050_v26 = vsel %vm1046_vm4, %v2073_v54, %v2318_v50  ;;  %v420_v61 = vrot.slane %v383_v35, 1 }
  0xe8   : > { %v2425_v31 = vpop.permute.xlu0 %947  ;;  %v839_v20 = vsel %vm645_vm2, %v837_v63, %v838_v0 }
  0xe9   : > { %969 = vrot.lane.b32.xlu1 %v786_v49, %s1860_s26 }
  0xea   : > { %953 = vrot.lane.b32.xlu0 %v2023_v23, %s1860_s26 }
  0xeb   : > { %v1015_v44 = vpop.permute.xlu1 %1014 }
  0xec   : > { %v1174_v60 = vsel %vm1165_vm11, %v1157_v39, %v1015_v44  ;;  %v999_v46 = vpop.permute.xlu0 %998 }
  0xed   : > { %765 = vrot.lane.b32.xlu1 %v2362_v15, %s2817_s27  ;;  %1652 = vmatprep.mubr.msk.f32.mxu1 %vm1194_vm12, %v1174_v60  ;;  %v1166_v33 = vsel %vm1165_vm11, %v1149_v7, %v999_v46  ;;  %v1073_v15 = vsel %vm1063_vm5, %v1056_v1, %v2248_v43  ;;  %v1048_v43 = vsel %vm1046_vm4, %v2040_v34, %v2260_v47 }
  0xee   : > { %749 = vrot.lane.b32.xlu0 %v2009_v14, %s2817_s27  ;;  %1640 = vmatprep.mubr.msk.f32.mxu0 %vm1194_vm12, %v1166_v33  ;;  %v1090_v38 = vsel %vm1080_vm6, %v1073_v15, %v2270_v56  ;;  %v1067_v14 = vsel %vm1063_vm5, %v1050_v26, %v2341_v59  ;;  %v1065_v34 = vsel %vm1063_vm5, %v1048_v43, %v2273_v58 }
  0xef   : > { %v622_v9 = vpop.permute.xlu1 %621  ;;  %v1107_v54 = vsel %vm1097_vm7, %v1090_v38, %v2297_v11  ;;  %v1082_v11 = vsel %vm1080_vm6, %v1065_v34, %v2280_v62  ;;  %v840_v62 = vrot.slane %v2419_v52, 2  ;;  %v384_v52 = vld [vmem:[%s375_s9 + $0x8] sm:$0xff] }
  0xf0   : > { %v1124_v56 = vsel %vm1114_vm8, %v1107_v54, %v2323_v51  ;;  %v470_v60 = vrot.slane %v384_v52, 7 }
  0xf1   : > { %817 = vrot.lane.b32.xlu1 %v786_v49, %s1857_s13  ;;  %v606_v49 = vpop.permute.xlu0 %605  ;;  %v1141_v59 = vsel %vm1131_vm9, %v1124_v56, %v2348_v45  ;;  %v1099_v45 = vsel %vm1097_vm7, %v1082_v11, %v2308_v32 }
  0xf2   : > { %801 = vrot.lane.b32.xlu0 %v2023_v23, %s1857_s13  ;;  %v1084_v23 = vsel %vm1080_vm6, %v1067_v14, %v2379_v12  ;;  %v1158_v12 = vsel %vm1148_vm10, %v1141_v59, %v2395_v53  ;;  %v1116_v58 = vsel %vm1114_vm8, %v1099_v45, %v2330_v2  ;;  %v841_v2 = vsel %vm645_vm2, %v838_v0, %v840_v62 }
  0xf3   : > { %v812_v55 = vpop.permute.xlu1 %811  ;;  %v1133_v53 = vsel %vm1131_vm9, %v1116_v58, %v2354_v6  ;;  %v1059_v6 = vsel %vm1046_vm4, %v2126_v19, %v622_v9  ;;  %v1051_v57 = vsel %vm1046_vm4, %v2134_v27, %v606_v49  ;;  %v509_v9 = vrot.slane %v384_v52, 5  ;;  %v2820_v49 = vld [vmem:[#allocation10_spill] sm:$0xff]  ;;  %v2823_v58 = vld [vmem:[#allocation8_spill] sm:$0xff] }
  0xf4   : > { %v2458_v4 = vsel %vm1097_vm7, %v1092_v40, %v812_v55  ;;  %v1150_v32 = vsel %vm1148_vm10, %v1133_v53, %v2425_v31 }
  0xf5   : > { %971 = vrot.lane.b32.xlu1 %v788_v17, %s1860_s26  ;;  %v796_v50 = vpop.permute.xlu0 %795  ;;  %v539_v41 = vsel %vm441_vm0, %v470_v60, %v509_v9 }
  0xf6   : > { %v2488_v13 = vsel %vm1097_vm7, %v1084_v23, %v796_v50  ;;  %955 = vrot.lane.b32.xlu0 %v2020_v22, %s1860_s26  ;;  %v943_v55 = vrot.slane %v539_v41, 1  ;;  %v2821_v50 = vld [vmem:[#allocation6_spill] sm:$0xff]  ;;  %v996_v59 = vrot.slane %v539_v41, 2 }
  0xf7   : > { %v2476_v29 = vpop.permute.xlu1 %862 }
  0xf9   : > { %1022 = vrot.lane.b32.xlu1 %v839_v20, %s1861_s10  ;;  %v2502_v51 = vpop.permute.xlu0 %846 }
  0xfa   : > { %1006 = vrot.lane.b32.xlu0 %v2031_v24, %s1861_s10 }
  0xfb   : > { %v1017_v47 = vpop.permute.xlu1 %1016 }
  0xfc   : > { %v1175_v21 = vsel %vm1165_vm11, %v1158_v12, %v1017_v47 }
  0xfd   : > { %819 = vrot.lane.b32.xlu1 %v788_v17, %s1857_s13  ;;  %1653 = vmatmul.mubr.msk.f32.vlgmr.msra.gmra.mrb[0].mxu1 %vm1194_vm12, %v1175_v21  ;;  %v1001_v3 = vpop.permute.xlu0 %1000  ;;  %v2819_v17 = vld [vmem:[#allocation5_spill] sm:$0xff] }
  0xfe   : > { %v1167_v37 = vsel %vm1165_vm11, %v1150_v32, %v1001_v3  ;;  %803 = vrot.lane.b32.xlu0 %v2020_v22, %s1857_s13  ;;  %v469_v22 = vrot.slane %v383_v35, 7  ;;  %v2824_v3 = vld [vmem:[#allocation9_spill] sm:$0xff] }
  0xff   : > { %v624_v16 = vpop.permute.xlu1 %623  ;;  %1641 = vmatmul.mubr.msk.f32.vlgmr.msra.gmra.mrb[0].mxu0 %vm1194_vm12, %v1167_v37 }
 0x100   : > { %v529_v25 = vsel %vm441_vm0, %v420_v61, %v469_v22  ;;  %v1060_v5 = vsel %vm1046_vm4, %v2142_v30, %v624_v16 }
 0x101   : > { %870 = vrot.lane.b32.xlu1 %v839_v20, %s1858_s14  ;;  %v608_v39 = vpop.permute.xlu0 %607  ;;  %v940_v27 = vrot.slane %v529_v25, 1  ;;  %v993_v20 = vrot.slane %v529_v25, 2 }
 0x102   : > { %854 = vrot.lane.b32.xlu0 %v2031_v24, %s1858_s14  ;;  %v471_v24 = vsel %vm441_vm0, %v469_v22, %v470_v60  ;;  %v1052_v1 = vsel %vm1046_vm4, %v2820_v49, %v608_v39  ;;  %v1117_v22 = vsel %vm1114_vm8, %v2410_v28, %v2502_v51 }
 0x103   : > { %v711_v18 = vpop.permute.xlu1 %710  ;;  %v941_v46 = vrot.slane %v471_v24, 1  ;;  %v994_v38 = vrot.slane %v471_v24, 2 }
 0x104   : > { %v1076_v44 = vsel %vm1063_vm5, %v1059_v6, %v711_v18  ;;  %v1125_v6 = vsel %vm1114_vm8, %v2382_v10, %v2476_v29 }
 0x105   : > { %1024 = vrot.lane.b32.xlu1 %v841_v2, %s1861_s10  ;;  %v695_v19 = vpop.permute.xlu0 %694  ;;  %v942_v40 = vsel %vm556_vm1, %v940_v27, %v941_v46  ;;  %v944_v14 = vsel %vm556_vm1, %v941_v46, %v943_v55  ;;  %v995_v56 = vsel %vm645_vm2, %v993_v20, %v994_v38  ;;  %v997_v47 = vsel %vm645_vm2, %v994_v38, %v996_v59  ;;  %v2825_v55 = vld [vmem:[#allocation11_spill] sm:$0xff] }
 0x106   : > { %v1068_v42 = vsel %vm1063_vm5, %v1051_v57, %v695_v19  ;;  %1008 = vrot.lane.b32.xlu0 %v2046_v36, %s1861_s10 }
 0x107   : > { %v2533_v31 = vpop.permute.xlu1 %864 }
 0x108   : > { %v1126_v28 = vsel %vm1114_vm8, %v2458_v4, %v2533_v31 }
 0x109   : > { %872 = vrot.lane.b32.xlu1 %v841_v2, %s1858_s14  ;;  %v2543_v7 = vpop.permute.xlu0 %848 }
 0x10a   : > { %856 = vrot.lane.b32.xlu0 %v2046_v36, %s1858_s14 }
 0x10b   : > { %v912_v8 = vpop.permute.xlu1 %911 }
 0x10c   : > { %v1142_v35 = vsel %vm1131_vm9, %v1125_v6, %v912_v8 }
 0x10d   : > { %919 = vrot.lane.b32.xlu1 %v529_v25, %s2814_s30  ;;  %v896_v63 = vpop.permute.xlu0 %895 }
 0x10e   : > { %903 = vrot.lane.b32.xlu0 %v2819_v17, %s2814_s30  ;;  %v1134_v60 = vsel %vm1131_vm9, %v1117_v22, %v896_v63  ;;  %v1118_v63 = vsel %vm1114_vm8, %v2488_v13, %v2543_v7  ;;  %v2826_v7 = vld [vmem:[#allocation12_spill] sm:$0xff] }
 0x10f   : > { %v713_v33 = vpop.permute.xlu1 %712 }
 0x110   : > { %v1077_v0 = vsel %vm1063_vm5, %v1060_v5, %v713_v33 }
 0x111   : > { %921 = vrot.lane.b32.xlu1 %v471_v24, %s2814_s30  ;;  %v697_v15 = vpop.permute.xlu0 %696 }
 0x112   : > { %v1069_v26 = vsel %vm1063_vm5, %v1052_v1, %v697_v15  ;;  %905 = vrot.lane.b32.xlu0 %v2063_v48, %s2814_s30  ;;  %v2822_v48 = vld [vmem:[#allocation7_spill] sm:$0xff] }
 0x113   : > { %v760_v36 = vpop.permute.xlu1 %759 }
 0x114   : > { %v1093_v30 = vsel %vm1080_vm6, %v1076_v44, %v760_v36 }
 0x115   : > { %973 = vrot.lane.b32.xlu1 %v942_v40, %s1860_s26  ;;  %v744_v54 = vpop.permute.xlu0 %743 }
 0x116   : > { %v1085_v23 = vsel %vm1080_vm6, %v1068_v42, %v744_v54  ;;  %957 = vrot.lane.b32.xlu0 %v2821_v50, %s1860_s26 }
 0x117   : > { %v914_v43 = vpop.permute.xlu1 %913 }
 0x118   : > { %v1143_v27 = vsel %vm1131_vm9, %v1126_v28, %v914_v43 }
 0x119   : > { %975 = vrot.lane.b32.xlu1 %v944_v14, %s1860_s26  ;;  %v898_v12 = vpop.permute.xlu0 %897 }
 0x11a   : > { %959 = vrot.lane.b32.xlu0 %v2822_v48, %s1860_s26  ;;  %s1862_s26 = smov [#allocation2]  }
 0x11b   : > { %v966_v34 = vpop.permute.xlu1 %965  ;;  %s1762_s12 = sshll.u32 %s1862_s26, 4  ;;  %s1763_s12 = int_to_ptr.vmem [resolvable:$false] %s1762_s12 }
 0x11c   : > { %v1159_v39 = vsel %vm1148_vm10, %v1142_v35, %v966_v34  ;;  %s1764_s16 = scalar_lea.vmem %s1763_s12, 4096 }
 0x11d   : > { %1026 = vrot.lane.b32.xlu1 %v995_v56, %s1861_s10  ;;  %v950_v21 = vpop.permute.xlu0 %949 }
 0x11e   : > { %1010 = vrot.lane.b32.xlu0 %v2823_v58, %s1861_s10  ;;  %v1151_v29 = vsel %vm1148_vm10, %v1134_v60, %v950_v21 }
 0x11f   : > { %v762_v11 = vpop.permute.xlu1 %761 }
 0x120   : > { %v1094_v45 = vsel %vm1080_vm6, %v1077_v0, %v762_v11  ;;  %v1135_v0 = vsel %vm1131_vm9, %v1118_v63, %v898_v12 }
 0x121   : > { %1028 = vrot.lane.b32.xlu1 %v997_v47, %s1861_s10  ;;  %v746_v53 = vpop.permute.xlu0 %745 }
 0x122   : > { %v1086_v32 = vsel %vm1080_vm6, %v1069_v26, %v746_v53  ;;  %1012 = vrot.lane.b32.xlu0 %v2824_v3, %s1861_s10  ;;  %s332_s10 = sand.u32 1, %s1828_s19  }
 0x123   : > { %v814_v62 = vpop.permute.xlu1 %813  ;;  %s1563_s13 = sshll.u32 %s332_s10, 7  ;;  %s2729_s22 = scalar_lea.sflag [#allocation3], %s332_s10 }
 0x124   : > { %v2578_v16 = vsel %vm1097_vm7, %v1093_v30, %v814_v62  ;;  %s2699_s30 = scalar_lea.vmem [#allocation2], %s1563_s13 }
 0x125   : > { %v798_v2 = vpop.permute.xlu0 %797  ;;  %s1425_s27 = sshll.u32 %s2699_s30, 4  ;;  %s2723_s27 = int_to_ptr.vmem [resolvable:$true] %s1425_s27 }
 0x126   : > { %v2587_v18 = vsel %vm1097_vm7, %v1085_v23, %v798_v2  ;;  %s1758_s14 = scalar_lea.vmem %s2723_s27, 2048  ;;  %p1765_p9 = scmp.lt.s32.totalorder %s2723_s27, %s1763_s12 }
 0x127   : > { %v968_v37 = vpop.permute.xlu1 %967  ;;  %p1759_p5 = scmp.ne.s32.totalorder %s2723_s27, %s1758_s14  ;;  %p1766_p10 = scmp.lt.s32.totalorder %s1764_s16, %s1758_s14 }
 0x128   : > { %v1160_v46 = vsel %vm1148_vm10, %v1143_v27, %v968_v37 }
 0x129   : > { %v952_v52 = vpop.permute.xlu0 %951  ;;  %p1760_p6 = pnand %p1759_p5, %p1945_p3  ;;  %p1767_p11 = por %p1766_p10, %p1765_p9 }
 0x12a   : > { %v1152_v4 = vsel %vm1148_vm10, %v1135_v0, %v952_v52 }
 0x12b   : > { %v1019_v44 = vpop.permute.xlu1 %1018  ;;  %p1761_p7 = pneg %p1760_p6 }
 0x12c   : > { %v1176_v61 = vsel %vm1165_vm11, %v1159_v39, %v1019_v44 }
 0x12d   : > { %1655 = vmatprep.mubr.msk.f32.mxu1 %vm1194_vm12, %v1176_v61  ;;  %v1003_v57 = vpop.permute.xlu0 %1002  ;;  %p1768_p12 = pnand %p1767_p11, %p1761_p7 }
 0x12e   : > { %v1168_v19 = vsel %vm1165_vm11, %v1151_v29, %v1003_v57 }
 0x12f   : > { %v626_v10 = vpop.permute.xlu1 %625  ;;  %1643 = vmatprep.mubr.msk.f32.mxu0 %vm1194_vm12, %v1168_v19 }
 0x130   : > { %v1061_v36 = vsel %vm1046_vm4, %v2825_v55, %v626_v10 }
 0x131   : > { %v610_v25 = vpop.permute.xlu0 %609 }
 0x132   : > { %v1053_v30 = vsel %vm1046_vm4, %v2826_v7, %v610_v25 }
 0x133   : > { %v816_v42 = vpop.permute.xlu1 %815 }
 0x134   : > { %v1111_v8 = vsel %vm1097_vm7, %v1094_v45, %v816_v42 }
 0x135   : > { %v800_v9 = vpop.permute.xlu0 %799 }
 0x136   : > { %v1103_v51 = vsel %vm1097_vm7, %v1086_v32, %v800_v9 }
 0x137   : > { %v867_v24 = vpop.permute.xlu1 %866 }
 0x138   : > { %v1127_v62 = vsel %vm1114_vm8, %v2578_v16, %v867_v24 }
 0x139   : > { %v851_v33 = vpop.permute.xlu0 %850 }
 0x13a   : > { %v1119_v6 = vsel %vm1114_vm8, %v2587_v18, %v851_v33 }
 0x13b   : > { %v1021_v5 = vpop.permute.xlu1 %1020 }
 0x13c   : > { %v1177_v41 = vsel %vm1165_vm11, %v1160_v46, %v1021_v5 }
 0x13d   : > { %1656 = vmatmul.mubr.msk.f32.gmra.mrb[2].mxu1 %vm1194_vm12, %v1177_v41  ;;  %v1005_v31 = vpop.permute.xlu0 %1004 }
 0x13e   : > { %v1169_v40 = vsel %vm1165_vm11, %v1152_v4, %v1005_v31 }
 0x13f   : > { %v2613_v17 = vpop.permute.xlu1 %627  ;;  %1644 = vmatmul.mubr.msk.f32.gmra.mrb[2].mxu0 %vm1194_vm12, %v1169_v40  ;;  %v2827_v40 = vld [vmem:[#allocation13_spill] sm:$0xff] }
 0x140   : > { %v1062_v55 = vsel %vm1046_vm4, %v2827_v40, %v2613_v17 }
 0x141   : > { %v2620_v1 = vpop.permute.xlu0 %611 }
 0x143   : > { %v715_v49 = vpop.permute.xlu1 %714 }
 0x144   : > { %v1078_v15 = vsel %vm1063_vm5, %v1061_v36, %v715_v49 }
 0x145   : > { %v699_v26 = vpop.permute.xlu0 %698 }
 0x146   : > { %v2626_v20 = vsel %vm1063_vm5, %v1053_v30, %v699_v26 }
 0x147   : > { %v869_v13 = vpop.permute.xlu1 %868 }
 0x148   : > { %v1128_v60 = vsel %vm1114_vm8, %v1111_v8, %v869_v13 }
 0x149   : > { %v853_v14 = vpop.permute.xlu0 %852 }
 0x14a   : > { %v1120_v42 = vsel %vm1114_vm8, %v1103_v51, %v853_v14 }
 0x14b   : > { %v916_v38 = vpop.permute.xlu1 %915 }
 0x14c   : > { %v1144_v53 = vsel %vm1131_vm9, %v1127_v62, %v916_v38 }
 0x14d   : > { %v900_v54 = vpop.permute.xlu0 %899 }
 0x14e   : > { %v1136_v35 = vsel %vm1131_vm9, %v1119_v6, %v900_v54 }
 0x14f   : > { %v717_v43 = vpop.permute.xlu1 %716 }
 0x150   : > { %v1079_v49 = vsel %vm1063_vm5, %v1062_v55, %v717_v43  ;;  %v2828_v43 = vld [vmem:[#allocation14_spill] sm:$0xff] }
 0x151   : > { %v2628_v50 = vpop.permute.xlu0 %700 }
 0x153   : > { %v764_v23 = vpop.permute.xlu1 %763 }
 0x154   : > { %v1095_v0 = vsel %vm1080_vm6, %v1078_v15, %v764_v23 }
 0x155   : > { %v748_v59 = vpop.permute.xlu0 %747 }
 0x156   : > { %v1087_v15 = vsel %vm1080_vm6, %v2626_v20, %v748_v59 }
 0x157   : > { %v918_v56 = vpop.permute.xlu1 %917 }
 0x158   : > { %v1145_v10 = vsel %vm1131_vm9, %v1128_v60, %v918_v56  ;;  %v1054_v56 = vsel %vm1046_vm4, %v2828_v43, %v2620_v1 }
 0x159   : > { %v902_v12 = vpop.permute.xlu0 %901  ;;  %v1071_v20 = vsel %vm1063_vm5, %v1054_v56, %v2628_v50 }
 0x15a   : > { %v1137_v25 = vsel %vm1131_vm9, %v1120_v42, %v902_v12 }
 0x15b   : > { %v970_v34 = vpop.permute.xlu1 %969 }
 0x15c   : > { %v1161_v32 = vsel %vm1148_vm10, %v1144_v53, %v970_v34 }
 0x15d   : > { %v954_v47 = vpop.permute.xlu0 %953 }
 0x15e   : > { %v1153_v44 = vsel %vm1148_vm10, %v1136_v35, %v954_v47 }
 0x15f   : > { %v766_v48 = vpop.permute.xlu1 %765 }
 0x160   : > { %v1096_v7 = vsel %vm1080_vm6, %v1079_v49, %v766_v48 }
 0x161   : > { %v2630_v21 = vpop.permute.xlu0 %749 }
 0x163   : > { %v818_v11 = vpop.permute.xlu1 %817 }
 0x164   : > { %v1112_v51 = vsel %vm1097_vm7, %v1095_v0, %v818_v11  ;;  %v1088_v11 = vsel %vm1080_vm6, %v1071_v20, %v2630_v21 }
 0x165   : > { %v802_v58 = vpop.permute.xlu0 %801 }
 0x166   : > { %v1104_v17 = vsel %vm1097_vm7, %v1087_v15, %v802_v58 }
 0x167   : > { %v972_v45 = vpop.permute.xlu1 %971 }
 0x168   : > { %v1162_v29 = vsel %vm1148_vm10, %v1145_v10, %v972_v45 }
 0x169   : > { %v956_v37 = vpop.permute.xlu0 %955 }
 0x16a   : > { %v1154_v9 = vsel %vm1148_vm10, %v1137_v25, %v956_v37 }
 0x16b   : > { %v1023_v3 = vpop.permute.xlu1 %1022 }
 0x16c   : > { %v1178_v2 = vsel %vm1165_vm11, %v1161_v32, %v1023_v3 }
 0x16d   : > { %1658 = vmatprep.mubr.msk.f32.mxu1 %vm1194_vm12, %v1178_v2  ;;  %v1007_v52 = vpop.permute.xlu0 %1006  ;;  %v1577_v2 = vld [vmem:[%s2786_s4] ss:$0 sm:$0xff] }
 0x16e   : > { %v1170_v16 = vsel %vm1165_vm11, %v1153_v44, %v1007_v52 }
 0x16f   : > { %v820_v39 = vpop.permute.xlu1 %819  ;;  %1646 = vmatprep.mubr.msk.f32.mxu0 %vm1194_vm12, %v1170_v16 }
 0x170   : > { %v1113_v38 = vsel %vm1097_vm7, %v1096_v7, %v820_v39 }
 0x171   : > { %v804_v22 = vpop.permute.xlu0 %803 }
 0x172   : > { %v1105_v62 = vsel %vm1097_vm7, %v1088_v11, %v804_v22 }
 0x173   : > { %v871_v61 = vpop.permute.xlu1 %870 }
 0x174   : > { %v1129_v36 = vsel %vm1114_vm8, %v1112_v51, %v871_v61 }
 0x175   : > { %v855_v18 = vpop.permute.xlu0 %854 }
 0x176   : > { %v1121_v34 = vsel %vm1114_vm8, %v1104_v17, %v855_v18 }
 0x177   : > { %v1025_v57 = vpop.permute.xlu1 %1024 }
 0x178   : > { %v1179_v19 = vsel %vm1165_vm11, %v1162_v29, %v1025_v57 }
 0x179   : > { %1659 = vmatmul.mubr.msk.f32.gmra.mrb[4].mxu1 %vm1194_vm12, %v1179_v19  ;;  %v1009_v28 = vpop.permute.xlu0 %1008 }
 0x17a   : > { %v1171_v8 = vsel %vm1165_vm11, %v1154_v9, %v1009_v28 }
 0x17b   : > { %v873_v24 = vpop.permute.xlu1 %872  ;;  %1647 = vmatmul.mubr.msk.f32.gmra.mrb[4].mxu0 %vm1194_vm12, %v1171_v8 }
 0x17c   : > { %v1130_v23 = vsel %vm1114_vm8, %v1113_v38, %v873_v24 }
 0x17d   : > { %v857_v46 = vpop.permute.xlu0 %856 }
 0x17e   : > { %v1122_v50 = vsel %vm1114_vm8, %v1105_v62, %v857_v46 }
 0x17f   : > { %v920_v27 = vpop.permute.xlu1 %919 }
 0x180   : > { %v1146_v13 = vsel %vm1131_vm9, %v1129_v36, %v920_v27 }
 0x181   : > { %v904_v33 = vpop.permute.xlu0 %903 }
 0x182   : > { %v1138_v59 = vsel %vm1131_vm9, %v1121_v34, %v904_v33 }
 0x183   : > { %v922_v5 = vpop.permute.xlu1 %921 }
 0x184   : > { %v1147_v12 = vsel %vm1131_vm9, %v1130_v23, %v922_v5 }
 0x185   : > { %v906_v63 = vpop.permute.xlu0 %905 }
 0x186   : > { %v1139_v32 = vsel %vm1131_vm9, %v1122_v50, %v906_v63 }
 0x187   : > { %v974_v41 = vpop.permute.xlu1 %973 }
 0x188   : > { %v1163_v30 = vsel %vm1148_vm10, %v1146_v13, %v974_v41 }
 0x189   : > { %v958_v31 = vpop.permute.xlu0 %957 }
 0x18a   : > { %v1155_v45 = vsel %vm1148_vm10, %v1138_v59, %v958_v31 }
 0x18b   : > { %v976_v4 = vpop.permute.xlu1 %975 }
 0x18c   : > { %v1164_v48 = vsel %vm1148_vm10, %v1147_v12, %v976_v4 }
 0x18d   : > { %v960_v14 = vpop.permute.xlu0 %959 }
 0x18e   : > { %v1156_v3 = vsel %vm1148_vm10, %v1139_v32, %v960_v14 }
 0x18f   : > { %v1027_v26 = vpop.permute.xlu1 %1026 }
 0x190   : > { %v1180_v54 = vsel %vm1165_vm11, %v1163_v30, %v1027_v26 }
 0x191   : > { %1661 = vmatprep.mubr.msk.f32.mxu1 %vm1194_vm12, %v1180_v54  ;;  %v1011_v1 = vpop.permute.xlu0 %1010 }
 0x192   : > { %v1172_v53 = vsel %vm1165_vm11, %v1155_v45, %v1011_v1 }
 0x193   : > { %v1029_v47 = vpop.permute.xlu1 %1028  ;;  %1649 = vmatprep.mubr.msk.f32.mxu0 %vm1194_vm12, %v1172_v53 }
 0x194   : > { %v1181_v58 = vsel %vm1165_vm11, %v1164_v48, %v1029_v47 }
 0x195   : > { %1662 = vmatmul.mubr.msk.f32.gmra.mrb[6].mxu1 %vm1194_vm12, %v1181_v58  ;;  %v1013_v21 = vpop.permute.xlu0 %1012 }
 0x196   : > { %v1173_v37 = vsel %vm1165_vm11, %v1156_v3, %v1013_v21 }
 0x197   : > { %1650 = vmatmul.mubr.msk.f32.gmra.mrb[6].mxu0 %vm1194_vm12, %v1173_v37 }
 0x1d0   : > { %v1654_v6 = vpop.f32.mrb[0].mxu1 }
 0x1d1   : > { %v1359_v35 = vadd.f32 %v1654_v6, %v1577_v2  ;;  %v1353_v39 = vpop.f32.mrb[1].mxu1 }
 0x1d2   : > { %v1354_v44 = vadd.f32 %v1577_v2, %v1353_v39  ;;  %v1642_v52 = vpop.f32.mrb[0].mxu0 }
 0x1d3   : > { %1401 = vst [vmem:[%s2699_s30 + $0x48] sm:$0xff] %v1359_v35  ;;  %v1319_v16 = vadd.f32 %v1642_v52, %v1577_v2  ;;  %v1313_v61 = vpop.f32.mrb[1].mxu0 }
 0x1d4   : > { %1400 = vst [vmem:[%s2699_s30 + $0x40] sm:$0xff] %v1354_v44  ;;  %v1314_v22 = vadd.f32 %v1577_v2, %v1313_v61 }
 0x1d5   : > { %1393 = vst [vmem:[%s2699_s30 + $0x8] sm:$0xff] %v1319_v16 }
 0x1d6   : > { %1392 = vst [vmem:[%s2699_s30] sm:$0xff] %v1314_v22 }
 0x210   : > { %v1657_v60 = vpop.f32.mrb[2].mxu1 }
 0x211   : > { %v1369_v10 = vadd.f32 %v1657_v60, %v1577_v2  ;;  %v1363_v29 = vpop.f32.mrb[3].mxu1 }
 0x212   : > { %v1364_v57 = vadd.f32 %v1577_v2, %v1363_v29  ;;  %v1645_v18 = vpop.f32.mrb[2].mxu0 }
 0x213   : > { %1403 = vst [vmem:[%s2699_s30 + $0x58] sm:$0xff] %v1369_v10  ;;  %v1329_v19 = vadd.f32 %v1645_v18, %v1577_v2  ;;  %v1323_v42 = vpop.f32.mrb[3].mxu0 }
 0x214   : > { %1402 = vst [vmem:[%s2699_s30 + $0x50] sm:$0xff] %v1364_v57  ;;  %v1324_v25 = vadd.f32 %v1577_v2, %v1323_v42 }
 0x215   : > { %1395 = vst [vmem:[%s2699_s30 + $0x18] sm:$0xff] %v1329_v19 }
 0x216   : > { %1394 = vst [vmem:[%s2699_s30 + $0x10] sm:$0xff] %v1324_v25 }
 0x24c   : > { %v1660_v24 = vpop.f32.mrb[4].mxu1 }
 0x24d   : > { %v1379_v9 = vadd.f32 %v1660_v24, %v1577_v2  ;;  %v1373_v28 = vpop.f32.mrb[5].mxu1 }
 0x24e   : > { %v1374_v8 = vadd.f32 %v1577_v2, %v1373_v28  ;;  %v1648_v27 = vpop.f32.mrb[4].mxu0 }
 0x24f   : > { %1405 = vst [vmem:[%s2699_s30 + $0x68] sm:$0xff] %v1379_v9  ;;  %v1339_v46 = vadd.f32 %v1648_v27, %v1577_v2  ;;  %v1333_v5 = vpop.f32.mrb[5].mxu0 }
 0x250   : > { %1404 = vst [vmem:[%s2699_s30 + $0x60] sm:$0xff] %v1374_v8  ;;  %v1334_v33 = vadd.f32 %v1577_v2, %v1333_v5 }
 0x251   : > { %1397 = vst [vmem:[%s2699_s30 + $0x28] sm:$0xff] %v1339_v46 }
 0x252   : > { %1396 = vst [vmem:[%s2699_s30 + $0x20] sm:$0xff] %v1334_v33 }
 0x268   : > { %v1663_v41 = vpop.f32.mrb[6].mxu1 }
 0x269   : > { %v1389_v63 = vadd.f32 %v1663_v41, %v1577_v2  ;;  %v1383_v0 = vpop.f32.mrb[7].mxu1 }
 0x26a   : > { %v1384_v4 = vadd.f32 %v1577_v2, %v1383_v0  ;;  %v1651_v51 = vpop.f32.mrb[6].mxu0 }
 0x26b   : > { %1407 = vst [vmem:[%s2699_s30 + $0x78] sm:$0xff] %v1389_v63  ;;  %v1349_v31 = vadd.f32 %v1651_v51, %v1577_v2  ;;  %v1343_v40 = vpop.f32.mrb[7].mxu0 }
 0x26c   : > { %1406 = vst [vmem:[%s2699_s30 + $0x70] sm:$0xff] %v1384_v4  ;;  %v1344_v55 = vadd.f32 %v1577_v2, %v1343_v40 }
 0x26d   : > { %1399 = vst [vmem:[%s2699_s30 + $0x38] sm:$0xff] %v1349_v31 }
 0x26e   : > { %1398 = vst [vmem:[%s2699_s30 + $0x30] sm:$0xff] %v1344_v55 }
 0x26f   : > { %1771 = shalt.err (!%p1768_p12)
}
 0x270   : > { %s1772_s10 = scalar_lea.hbm %s2721_s21, 2048  ;;  %s1776_s8 = scalar_lea.hbm %s2787_s5, 8192 }
 0x271   : > { %p1773_p13 = scmp.ne.s32.totalorder %s2721_s21, %s1772_s10  ;;  %p1777_p2 = scmp.lt.u32.totalorder %s2721_s21, %s2787_s5 }
 0x272   : > { %p1778_p4 = scmp.lt.u32.totalorder %s1776_s8, %s1772_s10  ;;  %p1780_p6 = scmp.lt.u32.totalorder %s1772_s10, %s2721_s21 }
 0x273   : > { %p1774_p0 = pnand %p1773_p13, %p1945_p3 }
 0x274   : > { %p1779_p5 = por %p1778_p4, %p1777_p2 }
 0x275   : > { %p1775_p1 = pneg %p1774_p0 }
 0x276   : > { %p1781_p7 = por %p1780_p6, %p1779_p5 }
 0x278   : > { %p1782_p9 = pnand %p1781_p7, %p1775_p1 }
 0x27a   : > { %1785 = shalt.err (!%p1782_p9)
}
 0x27b   : > { %s1863_s14 = smov 128  }
 0x27c   : > { %1678 = dma.vmem_to_hbm [thread:$0]  (%p1945_p3), %s2723_s27, 2048, %s2721_s21, %s2729_s22, %s1863_s14, %s1863_s14, %s2812_s17  }
 0x27d PF: > { %p1684_p10 = scmp.ge.s32.totalorder %s1852_s25, 2  ;;  %s1440_s26 = sand.u32 1, %s1824_s18  }
 0x27e   : > { %s1441_s12 = scalar_lea.sflag [#allocation3], %s1440_s26 }
 0x27f   : > { %p1681_p11 = pnand %p1684_p10, %p1954_p8 }
 0x281   : > { %1819 = dma.done.wait (!%p1681_p11), %s1441_s12, 2048  }
 0x282   : > { %1821 = vsyncadd (!%p1681_p11), %s1441_s12, 4294965248  ;;  %s18_s25 = sadd.s32 1, %s1852_s25   ;;  %s2829_s18 = smov %s1828_s19 }
 0x283   : > { %p15_p12 = scmp.ge.s32.totalorder %s18_s25, 6   ;;  %s2830_s19 = smov %s1832_s20 }
 0x284   : > { %s2831_s20 = smov %s1963_s11  ;;  %s2832_s21 = smov %s1844_s23 }
 0x285   : > { %s2833_s22 = smov %s1848_s24  ;;  %s2834_s23 = smov %s2837_s28 }
 0x286   : > { %s2835_s24 = smov %s2841_s29  ;;  %17 = sbr.rel (!%p15_p12) target bundleno = 5 (0x5), region = 81 }
 0x28d   :  { %1446 = vsyncpa [#allocation3], 1 }
 0x28e   :  { %1448 = vsyncpa [#allocation3 + $0x1], 1 }

</bundles_post_ra>
